<compile_context>
chip_gen: v5e
topology: v5e:2x2
jax: 0.10.0
libtpu: 0.0.40
codegen_flags: <defaults>
</compile_context>

<pallas_src>
import jax
import jax.numpy as jnp
from jax import lax
from jax.experimental import pallas as pl
from jax.experimental.pallas import tpu as pltpu


def _round_up(x, m):
    return (x + m - 1) // m * m


def gru_kernel(x_ref, wih_ref, bi_ref, whh_ref, bhn_ref, out_ref, gx_ref, h_ref):
    """One (batch_tile, time_chunk) grid step.

    x_ref  : (TC, B_TILE, F_pad)       raw time-major input chunk
    wih_ref: (F_pad, 3*H_pad)          fused input weights  [W_ir | W_iz | W_in]
    bi_ref : (1, 3*H_pad)              fused input-side biases (r,z: b_i+b_h; n: b_in only)
    whh_ref: (H_pad, 3*H_pad)          fused hidden weights [W_hr | W_hz | W_hn]
    bhn_ref: (1, H_pad)                hidden-side n-gate bias (must stay inside r*(...))
    out_ref: (TC, B_TILE, H_pad)       all hidden states of this chunk (time-major)
    gx_ref : (TC, B_TILE, 3*H_pad)     VMEM scratch: whole-chunk input projection
    h_ref  : (B_TILE, H_pad)           hidden state carried across time chunks
    """
    c = pl.program_id(1)  # time-chunk index (inner, "arbitrary" axis)

    @pl.when(c == 0)
    def _():
        # New batch tile -> reset the carried hidden state.
        h_ref[...] = jnp.zeros_like(h_ref)

    tc, bt, f = x_ref.shape
    hp = h_ref.shape[1]
    g3 = 3 * hp

    # Whole-chunk input projection: a single MXU matmul into VMEM scratch.
    # Reshapes only merge/split leading dims (bt % 8 == 0) -> layout-preserving.
    x2d = x_ref[...].reshape(tc * bt, f)
    gx = jnp.dot(x2d, wih_ref[...], preferred_element_type=jnp.float32) + bi_ref[...]
    gx_ref[...] = gx.reshape(tc, bt, g3)

    # Hoist the (1, H_pad) -> (B_TILE, H_pad) bias broadcast out of the time loop
    # (JAX does not CSE broadcast_in_dim inside loops).
    b_hn = jnp.broadcast_to(bhn_ref[...], (bt, hp))

    def step(t, carry):
        h = h_ref[...]                                   # (B_TILE, H_pad)
        gxt = gx_ref[t]                                  # (B_TILE, 3*H_pad) incl. input biases
        gh = jnp.dot(h, whh_ref[...],                    # single fused hidden matmul
                     preferred_element_type=jnp.float32)

        # PyTorch GRU (gate order r, z, n); b_ir+b_hr and b_iz+b_hz are already
        # folded into gxt, b_in is in gxt, b_hn must stay inside r * (...).
        r = jax.nn.sigmoid(gxt[:, 0 * hp:1 * hp] + gh[:, 0 * hp:1 * hp])
        z = jax.nn.sigmoid(gxt[:, 1 * hp:2 * hp] + gh[:, 1 * hp:2 * hp])
        n = jnp.tanh(gxt[:, 2 * hp:3 * hp] + r * (gh[:, 2 * hp:3 * hp] + b_hn))
        h_new = (1.0 - z) * n + z * h

        h_ref[...] = h_new
        out_ref[t] = h_new.astype(out_ref.dtype)
        return carry

    # Full unroll for short chunks, partial unroll otherwise: gives the scheduler
    # visibility to overlap the elementwise epilogue with the next MXU push.
    unroll = True if tc <= 16 else 4
    lax.fori_loop(0, tc, step, 0, unroll=unroll)


def _pick_tiles(B, T, F_pad, Hp, vmem_budget=40 << 20):
    """Choose (B_pad, B_TILE, T_pad, TC) so the VMEM working set fits the budget
    (kept well under v7x's 64 MiB physical VMEM)."""
    B_pad = _round_up(B, 8)
    B_TILE = min(B_pad, 128)
    B_pad = _round_up(B_pad, B_TILE)
    TC = max(1, min(T, 64))   # also minimizes wasted padded timesteps

    def est(tc, btile):
        g3 = 3 * Hp
        xb = tc * btile * F_pad * 4 * 2            # x block, double-buffered
        ob = tc * btile * Hp * 4 * 2               # out block, double-buffered
        wb = (F_pad * g3 + g3 + Hp * g3 + Hp) * 4 * 2   # weights/biases (constant index)
        scr = (tc * btile * g3 + btile * Hp) * 4   # gx + h scratch (single)
        return xb + ob + wb + scr

    while est(TC, B_TILE) > vmem_budget and TC > 8:
        TC = max(8, TC // 2)
    while est(TC, B_TILE) > vmem_budget and B_TILE > 8:
        B_TILE = max(8, B_TILE // 2)
        B_pad = _round_up(B, B_TILE)
    T_pad = _round_up(T, TC)
    return B_pad, B_TILE, T_pad, TC, est(TC, B_TILE)


def gru_encoder_forward(x_btf, params):
    """x_btf: (B, T, in_dim) float32 -> (B, T, H) float32 (all hidden states)."""
    B, T, F = x_btf.shape
    H = params["hid_dim"]
    Hp = params["w_hh_packed"].shape[0]
    F_pad = params["w_ih_packed"].shape[0]
    G3 = 3 * Hp

    B_pad, B_TILE, T_pad, TC, vmem_est = _pick_tiles(B, T, F_pad, Hp)
    nb = B_pad // B_TILE
    nc = T_pad // TC

    # Time-major + padded raw input (cheapest tensor to reshuffle in HBM; much
    # smaller than the old (T, B, 3*H_pad) x-projection intermediate).
    x_tbf = jnp.transpose(x_btf, (1, 0, 2))
    x_tbf = jnp.pad(x_tbf, ((0, T_pad - T), (0, B_pad - B), (0, F_pad - F)))

    # Explicit scoped-VMEM limit: above every generation's default, below v7x physical.
    vmem_limit = int(min(48 << 20, max(32 << 20, vmem_est + (4 << 20))))

    out_tbh = pl.pallas_call(
        gru_kernel,
        out_shape=jax.ShapeDtypeStruct((T_pad, B_pad, Hp), x_btf.dtype),
        grid_spec=pltpu.PrefetchScalarGridSpec(
            num_scalar_prefetch=0,
            grid=(nb, nc),
            in_specs=[
                pl.BlockSpec((TC, B_TILE, F_pad), lambda b, c: (c, b, 0)),
                # Constant index_map -> these blocks are DMA'd once, not per grid step.
                pl.BlockSpec((F_pad, G3), lambda b, c: (0, 0)),
                pl.BlockSpec((1, G3), lambda b, c: (0, 0)),
                pl.BlockSpec((Hp, G3), lambda b, c: (0, 0)),
                pl.BlockSpec((1, Hp), lambda b, c: (0, 0)),
            ],
            out_specs=pl.BlockSpec((TC, B_TILE, Hp), lambda b, c: (c, b, 0)),
            scratch_shapes=[
                pltpu.VMEM((TC, B_TILE, G3), jnp.float32),   # whole-chunk x projection
                pltpu.VMEM((B_TILE, Hp), jnp.float32),       # carried hidden state
            ],
        ),
        compiler_params=pltpu.CompilerParams(
            dimension_semantics=("parallel", "arbitrary"),   # batch parallel, time sequential
            vmem_limit_bytes=vmem_limit,
        ),
    )(x_tbf, params["w_ih_packed"], params["b_i_packed"],
      params["w_hh_packed"], params["b_hn_packed"])

    # Strip padding, then back to batch_first (module semantics). Output slab is
    # lane-dense (H_pad % 128 == 0).
    out = out_tbh[:T, :B, :H]
    return jnp.transpose(out, (1, 0, 2))


def init_gru_params(key, in_dim, hid_dim):
    """Deterministic init matching nn.GRU parameter shapes (uniform(-k, k), k=1/sqrt(H)),
    plus padded/fused packed forms used by the Pallas kernel."""
    k = 1.0 / jnp.sqrt(jnp.float32(hid_dim))
    k1, k2, k3, k4 = jax.random.split(key, 4)
    w_ih = jax.random.uniform(k1, (3 * hid_dim, in_dim), jnp.float32, -k, k)   # [r; z; n]
    w_hh = jax.random.uniform(k2, (3 * hid_dim, hid_dim), jnp.float32, -k, k)
    b_ih = jax.random.uniform(k3, (3 * hid_dim,), jnp.float32, -k, k)
    b_hh = jax.random.uniform(k4, (3 * hid_dim,), jnp.float32, -k, k)

    H = hid_dim
    Hp = _round_up(H, 128)            # pad hidden dim to full lanes
    Fp = _round_up(in_dim, 8)         # pad input dim to full sublanes (zero rows)
    names = ("r", "z", "n")

    gates = {}
    for g, name in enumerate(names):
        gates["w_i" + name] = w_ih[g * H:(g + 1) * H].T      # (F, H)  right-multiply form
        gates["w_h" + name] = w_hh[g * H:(g + 1) * H].T      # (H, H)
        gates["b_i" + name] = b_ih[g * H:(g + 1) * H]
        gates["b_h" + name] = b_hh[g * H:(g + 1) * H]

    # Fused + padded packed parameters: gate g lives in lanes [g*Hp, g*Hp + H).
    w_ih_packed = jnp.zeros((Fp, 3 * Hp), jnp.float32)
    w_hh_packed = jnp.zeros((Hp, 3 * Hp), jnp.float32)
    b_i_packed = jnp.zeros((1, 3 * Hp), jnp.float32)
    for g, name in enumerate(names):
        w_ih_packed = w_ih_packed.at[:in_dim, g * Hp:g * Hp + H].set(gates["w_i" + name])
        w_hh_packed = w_hh_packed.at[:H, g * Hp:g * Hp + H].set(gates["w_h" + name])
    # r/z gates: input- and hidden-side biases are purely additive -> fuse them here.
    # n gate: only b_in goes into the x-projection; b_hn must stay inside r*(W_hn h + b_hn).
    b_i_packed = b_i_packed.at[:, 0 * Hp:0 * Hp + H].set((gates["b_ir"] + gates["b_hr"])[None])
    b_i_packed = b_i_packed.at[:, 1 * Hp:1 * Hp + H].set((gates["b_iz"] + gates["b_hz"])[None])
    b_i_packed = b_i_packed.at[:, 2 * Hp:2 * Hp + H].set(gates["b_in"][None])
    b_hn_packed = jnp.zeros((1, Hp), jnp.float32).at[:, :H].set(gates["b_hn"][None])

    params = dict(gates)
    params.update({
        "hid_dim": H,
        "w_ih_packed": w_ih_packed,
        "w_hh_packed": w_hh_packed,
        "b_i_packed": b_i_packed,
        "b_hn_packed": b_hn_packed,
    })
    return params


def gru_reference(x_btf, params):
    """Pure-JAX reference (lax.scan) matching torch.nn.GRU for correctness checking."""
    B, T, _ = x_btf.shape
    H = params["hid_dim"]
    h0 = jnp.zeros((B, H), jnp.float32)

    def step(h, x_t):
        r = jax.nn.sigmoid(x_t @ params["w_ir"] + params["b_ir"]
                           + h @ params["w_hr"] + params["b_hr"])
        z = jax.nn.sigmoid(x_t @ params["w_iz"] + params["b_iz"]
                           + h @ params["w_hz"] + params["b_hz"])
        n = jnp.tanh(x_t @ params["w_in"] + params["b_in"]
                     + r * (h @ params["w_hn"] + params["b_hn"]))
        h_new = (1.0 - z) * n + z * h
        return h_new, h_new

    _, ys = jax.lax.scan(step, h0, jnp.transpose(x_btf, (1, 0, 2)))
    return jnp.transpose(ys, (1, 0, 2))


if __name__ == "__main__":
    B, T, IN_DIM, HID_DIM = 2, 8, 12, 64   # module defaults: in_dim=12, hid_dim=64

    key = jax.random.PRNGKey(0)
    kx, kp = jax.random.split(key)
    user_batch = jax.random.normal(kx, (B, T, IN_DIM), jnp.float32)
    params = init_gru_params(kp, IN_DIM, HID_DIM)

    out = gru_encoder_forward(user_batch, params)
    out = jax.block_until_ready(out)

    ref = gru_reference(user_batch, params)
    assert out.shape == (B, T, HID_DIM)
    assert jnp.allclose(out, ref, atol=1e-4, rtol=1e-4), "Pallas GRU mismatch vs reference"

    print("KERNEL_OK")
</pallas_src>

<mosaic_0001>
module attributes {stable_mosaic.version = 11 : i64} {
  func.func @gru_kernel(%arg0: i32, %arg1: i32, %arg2: memref<8x8x16xf32, #tpu.memory_space<vmem>>, %arg3: memref<16x384xf32, #tpu.memory_space<vmem>>, %arg4: memref<1x384xf32, #tpu.memory_space<vmem>>, %arg5: memref<128x384xf32, #tpu.memory_space<vmem>>, %arg6: memref<1x128xf32, #tpu.memory_space<vmem>>, %arg7: memref<8x8x128xf32, #tpu.memory_space<vmem>>, %arg8: memref<8x8x384xf32, #tpu.memory_space<vmem>>, %arg9: memref<8x128xf32, #tpu.memory_space<vmem>>) attributes {dimension_semantics = [#tpu.dimension_semantics<parallel>, #tpu.dimension_semantics<arbitrary>], iteration_bounds = array<i64: 1, 1>, scalar_prefetch = 0 : i64, scratch_operands = 2 : i64, tpu.core_type = #tpu.core_type<tc>, window_params = [{transform_indices = @transform_0, window_bounds = array<i64: 8, 8, 16>}, {pipeline_mode = #tpu.pipeline_mode<synchronous>, transform_indices = @transform_1, window_bounds = array<i64: 16, 384>}, {pipeline_mode = #tpu.pipeline_mode<synchronous>, transform_indices = @transform_2, window_bounds = array<i64: 1, 384>}, {pipeline_mode = #tpu.pipeline_mode<synchronous>, transform_indices = @transform_3, window_bounds = array<i64: 128, 384>}, {pipeline_mode = #tpu.pipeline_mode<synchronous>, transform_indices = @transform_4, window_bounds = array<i64: 1, 128>}, {transform_indices = @transform_5, window_bounds = array<i64: 8, 8, 128>}]} {
    %c0_i32 = arith.constant 0 : i32
    %0 = arith.cmpi eq, %arg1, %c0_i32 : i32
    %1 = arith.extui %0 : i1 to i32
    %c0_i32_0 = arith.constant 0 : i32
    %2 = arith.cmpi ne, %1, %c0_i32_0 : i32
    scf.if %2 {
      %cst_125 = arith.constant 0.000000e+00 : f32
      %319 = vector.broadcast %cst_125 : f32 to vector<8x128xf32>
      %c0_126 = arith.constant 0 : index
      %c0_127 = arith.constant 0 : index
      %320 = vector.load %arg9[%c0_126, %c0_127] : memref<8x128xf32, #tpu.memory_space<vmem>>, vector<8x128xf32>
      tpu.vector_store %arg9[%c0_126, %c0_127], %319 {strides = array<i32>} : memref<8x128xf32, #tpu.memory_space<vmem>>, vector<8x128xf32>,
    } else {
    }
    %c0 = arith.constant 0 : index
    %c0_1 = arith.constant 0 : index
    %c0_2 = arith.constant 0 : index
    %3 = vector.load %arg2[%c0, %c0_1, %c0_2] : memref<8x8x16xf32, #tpu.memory_space<vmem>>, vector<8x8x16xf32>
    %4 = vector.shape_cast %3 : vector<8x8x16xf32> to vector<64x16xf32>
    %c0_3 = arith.constant 0 : index
    %c0_4 = arith.constant 0 : index
    %5 = vector.load %arg3[%c0_3, %c0_4] : memref<16x384xf32, #tpu.memory_space<vmem>>, vector<16x384xf32>
    %cst = arith.constant dense<0.000000e+00> : vector<64x384xf32>
    %6 = tpu.matmul %4, %5, %cst {dimension_numbers = #tpu.dot_dimension_numbers<[1], [0], [0], [1], [0, 0, 1, 1], [], []>} : vector<64x16xf32>, vector<16x384xf32>, vector<64x384xf32> -> vector<64x384xf32>
    %c0_5 = arith.constant 0 : index
    %c0_6 = arith.constant 0 : index
    %7 = vector.load %arg4[%c0_5, %c0_6] : memref<1x384xf32, #tpu.memory_space<vmem>>, vector<1x384xf32>
    %8 = vector.broadcast %7 : vector<1x384xf32> to vector<64x384xf32>
    %9 = arith.addf %6, %8 : vector<64x384xf32>
    %10 = vector.shape_cast %9 : vector<64x384xf32> to vector<8x8x384xf32>
    %c0_7 = arith.constant 0 : index
    %c0_8 = arith.constant 0 : index
    %c0_9 = arith.constant 0 : index
    %11 = vector.load %arg8[%c0_7, %c0_8, %c0_9] : memref<8x8x384xf32, #tpu.memory_space<vmem>>, vector<8x8x384xf32>
    tpu.vector_store %arg8[%c0_7, %c0_8, %c0_9], %10 {strides = array<i32>} : memref<8x8x384xf32, #tpu.memory_space<vmem>>, vector<8x8x384xf32>,
    %c0_10 = arith.constant 0 : index
    %c0_11 = arith.constant 0 : index
    %12 = vector.load %arg6[%c0_10, %c0_11] : memref<1x128xf32, #tpu.memory_space<vmem>>, vector<1x128xf32>
    %13 = vector.shape_cast %12 : vector<1x128xf32> to vector<1x128xf32>
    %14 = vector.broadcast %13 : vector<1x128xf32> to vector<8x128xf32>
    %c0_i32_12 = arith.constant 0 : i32
    %c0_13 = arith.constant 0 : index
    %c0_14 = arith.constant 0 : index
    %15 = vector.load %arg9[%c0_13, %c0_14] : memref<8x128xf32, #tpu.memory_space<vmem>>, vector<8x128xf32>
    %16 = arith.index_cast %c0_i32_12 : i32 to index
    %c0_15 = arith.constant 0 : index
    %c0_16 = arith.constant 0 : index
    %17 = vector.load %arg8[%16, %c0_15, %c0_16] : memref<8x8x384xf32, #tpu.memory_space<vmem>>, vector<1x8x384xf32>
    %18 = vector.shape_cast %17 : vector<1x8x384xf32> to vector<8x384xf32>
    %c0_17 = arith.constant 0 : index
    %c0_18 = arith.constant 0 : index
    %19 = vector.load %arg5[%c0_17, %c0_18] : memref<128x384xf32, #tpu.memory_space<vmem>>, vector<128x384xf32>
    %cst_19 = arith.constant dense<0.000000e+00> : vector<8x384xf32>
    %20 = tpu.matmul %15, %19, %cst_19 {dimension_numbers = #tpu.dot_dimension_numbers<[1], [0], [0], [1], [0, 0, 1, 1], [], []>} : vector<8x128xf32>, vector<128x384xf32>, vector<8x384xf32> -> vector<8x384xf32>
    %21 = vector.extract_strided_slice %18 {offsets = [0, 0], sizes = [8, 128], strides = [1, 1]} : vector<8x384xf32> to vector<8x128xf32>
    %22 = vector.extract_strided_slice %20 {offsets = [0, 0], sizes = [8, 128], strides = [1, 1]} : vector<8x384xf32> to vector<8x128xf32>
    %23 = arith.addf %21, %22 : vector<8x128xf32>
    %24 = arith.negf %23 : vector<8x128xf32>
    %25 = math.exp %24 : vector<8x128xf32>
    %cst_20 = arith.constant 1.000000e+00 : f32
    %26 = vector.broadcast %cst_20 : f32 to vector<8x128xf32>
    %27 = arith.addf %26, %25 : vector<8x128xf32>
    %28 = arith.divf %26, %27 : vector<8x128xf32>
    %29 = vector.extract_strided_slice %18 {offsets = [0, 128], sizes = [8, 128], strides = [1, 1]} : vector<8x384xf32> to vector<8x128xf32>
    %30 = vector.extract_strided_slice %20 {offsets = [0, 128], sizes = [8, 128], strides = [1, 1]} : vector<8x384xf32> to vector<8x128xf32>
    %31 = arith.addf %29, %30 : vector<8x128xf32>
    %32 = arith.negf %31 : vector<8x128xf32>
    %33 = math.exp %32 : vector<8x128xf32>
    %cst_21 = arith.constant 1.000000e+00 : f32
    %34 = vector.broadcast %cst_21 : f32 to vector<8x128xf32>
    %35 = arith.addf %34, %33 : vector<8x128xf32>
    %36 = arith.divf %34, %35 : vector<8x128xf32>
    %37 = vector.extract_strided_slice %18 {offsets = [0, 256], sizes = [8, 128], strides = [1, 1]} : vector<8x384xf32> to vector<8x128xf32>
    %38 = vector.extract_strided_slice %20 {offsets = [0, 256], sizes = [8, 128], strides = [1, 1]} : vector<8x384xf32> to vector<8x128xf32>
    %39 = arith.addf %38, %14 : vector<8x128xf32>
    %40 = arith.mulf %28, %39 : vector<8x128xf32>
    %41 = arith.addf %37, %40 : vector<8x128xf32>
    %42 = math.tanh %41 : vector<8x128xf32>
    %cst_22 = arith.constant 1.000000e+00 : f32
    %43 = vector.broadcast %cst_22 : f32 to vector<8x128xf32>
    %44 = arith.subf %43, %36 : vector<8x128xf32>
    %45 = arith.mulf %44, %42 : vector<8x128xf32>
    %46 = arith.mulf %36, %15 : vector<8x128xf32>
    %47 = arith.addf %45, %46 : vector<8x128xf32>
    %c0_23 = arith.constant 0 : index
    %c0_24 = arith.constant 0 : index
    %48 = vector.load %arg9[%c0_23, %c0_24] : memref<8x128xf32, #tpu.memory_space<vmem>>, vector<8x128xf32>
    tpu.vector_store %arg9[%c0_23, %c0_24], %47 {strides = array<i32>} : memref<8x128xf32, #tpu.memory_space<vmem>>, vector<8x128xf32>,
    %49 = arith.index_cast %c0_i32_12 : i32 to index
    %c0_25 = arith.constant 0 : index
    %c0_26 = arith.constant 0 : index
    %50 = vector.load %arg7[%49, %c0_25, %c0_26] : memref<8x8x128xf32, #tpu.memory_space<vmem>>, vector<1x8x128xf32>
    %51 = vector.shape_cast %50 : vector<1x8x128xf32> to vector<8x128xf32>
    %52 = vector.shape_cast %47 : vector<8x128xf32> to vector<1x8x128xf32>
    tpu.vector_store %arg7[%49, %c0_25, %c0_26], %52 {strides = array<i32>} : memref<8x8x128xf32, #tpu.memory_space<vmem>>, vector<1x8x128xf32>,
    %c1_i32 = arith.constant 1 : i32
    %c0_27 = arith.constant 0 : index
    %c0_28 = arith.constant 0 : index
    %53 = vector.load %arg9[%c0_27, %c0_28] : memref<8x128xf32, #tpu.memory_space<vmem>>, vector<8x128xf32>
    %54 = arith.index_cast %c1_i32 : i32 to index
    %c0_29 = arith.constant 0 : index
    %c0_30 = arith.constant 0 : index
    %55 = vector.load %arg8[%54, %c0_29, %c0_30] : memref<8x8x384xf32, #tpu.memory_space<vmem>>, vector<1x8x384xf32>
    %56 = vector.shape_cast %55 : vector<1x8x384xf32> to vector<8x384xf32>
    %c0_31 = arith.constant 0 : index
    %c0_32 = arith.constant 0 : index
    %57 = vector.load %arg5[%c0_31, %c0_32] : memref<128x384xf32, #tpu.memory_space<vmem>>, vector<128x384xf32>
    %cst_33 = arith.constant dense<0.000000e+00> : vector<8x384xf32>
    %58 = tpu.matmul %53, %57, %cst_33 {dimension_numbers = #tpu.dot_dimension_numbers<[1], [0], [0], [1], [0, 0, 1, 1], [], []>} : vector<8x128xf32>, vector<128x384xf32>, vector<8x384xf32> -> vector<8x384xf32>
    %59 = vector.extract_strided_slice %56 {offsets = [0, 0], sizes = [8, 128], strides = [1, 1]} : vector<8x384xf32> to vector<8x128xf32>
    %60 = vector.extract_strided_slice %58 {offsets = [0, 0], sizes = [8, 128], strides = [1, 1]} : vector<8x384xf32> to vector<8x128xf32>
    %61 = arith.addf %59, %60 : vector<8x128xf32>
    %62 = arith.negf %61 : vector<8x128xf32>
    %63 = math.exp %62 : vector<8x128xf32>
    %cst_34 = arith.constant 1.000000e+00 : f32
    %64 = vector.broadcast %cst_34 : f32 to vector<8x128xf32>
    %65 = arith.addf %64, %63 : vector<8x128xf32>
    %66 = arith.divf %64, %65 : vector<8x128xf32>
    %67 = vector.extract_strided_slice %56 {offsets = [0, 128], sizes = [8, 128], strides = [1, 1]} : vector<8x384xf32> to vector<8x128xf32>
    %68 = vector.extract_strided_slice %58 {offsets = [0, 128], sizes = [8, 128], strides = [1, 1]} : vector<8x384xf32> to vector<8x128xf32>
    %69 = arith.addf %67, %68 : vector<8x128xf32>
    %70 = arith.negf %69 : vector<8x128xf32>
    %71 = math.exp %70 : vector<8x128xf32>
    %cst_35 = arith.constant 1.000000e+00 : f32
    %72 = vector.broadcast %cst_35 : f32 to vector<8x128xf32>
    %73 = arith.addf %72, %71 : vector<8x128xf32>
    %74 = arith.divf %72, %73 : vector<8x128xf32>
    %75 = vector.extract_strided_slice %56 {offsets = [0, 256], sizes = [8, 128], strides = [1, 1]} : vector<8x384xf32> to vector<8x128xf32>
    %76 = vector.extract_strided_slice %58 {offsets = [0, 256], sizes = [8, 128], strides = [1, 1]} : vector<8x384xf32> to vector<8x128xf32>
    %77 = arith.addf %76, %14 : vector<8x128xf32>
    %78 = arith.mulf %66, %77 : vector<8x128xf32>
    %79 = arith.addf %75, %78 : vector<8x128xf32>
    %80 = math.tanh %79 : vector<8x128xf32>
    %cst_36 = arith.constant 1.000000e+00 : f32
    %81 = vector.broadcast %cst_36 : f32 to vector<8x128xf32>
    %82 = arith.subf %81, %74 : vector<8x128xf32>
    %83 = arith.mulf %82, %80 : vector<8x128xf32>
    %84 = arith.mulf %74, %53 : vector<8x128xf32>
    %85 = arith.addf %83, %84 : vector<8x128xf32>
    %c0_37 = arith.constant 0 : index
    %c0_38 = arith.constant 0 : index
    %86 = vector.load %arg9[%c0_37, %c0_38] : memref<8x128xf32, #tpu.memory_space<vmem>>, vector<8x128xf32>
    tpu.vector_store %arg9[%c0_37, %c0_38], %85 {strides = array<i32>} : memref<8x128xf32, #tpu.memory_space<vmem>>, vector<8x128xf32>,
    %87 = arith.index_cast %c1_i32 : i32 to index
    %c0_39 = arith.constant 0 : index
    %c0_40 = arith.constant 0 : index
    %88 = vector.load %arg7[%87, %c0_39, %c0_40] : memref<8x8x128xf32, #tpu.memory_space<vmem>>, vector<1x8x128xf32>
    %89 = vector.shape_cast %88 : vector<1x8x128xf32> to vector<8x128xf32>
    %90 = vector.shape_cast %85 : vector<8x128xf32> to vector<1x8x128xf32>
    tpu.vector_store %arg7[%87, %c0_39, %c0_40], %90 {strides = array<i32>} : memref<8x8x128xf32, #tpu.memory_space<vmem>>, vector<1x8x128xf32>,
    %c2_i32 = arith.constant 2 : i32
    %c0_41 = arith.constant 0 : index
    %c0_42 = arith.constant 0 : index
    %91 = vector.load %arg9[%c0_41, %c0_42] : memref<8x128xf32, #tpu.memory_space<vmem>>, vector<8x128xf32>
    %92 = arith.index_cast %c2_i32 : i32 to index
    %c0_43 = arith.constant 0 : index
    %c0_44 = arith.constant 0 : index
    %93 = vector.load %arg8[%92, %c0_43, %c0_44] : memref<8x8x384xf32, #tpu.memory_space<vmem>>, vector<1x8x384xf32>
    %94 = vector.shape_cast %93 : vector<1x8x384xf32> to vector<8x384xf32>
    %c0_45 = arith.constant 0 : index
    %c0_46 = arith.constant 0 : index
    %95 = vector.load %arg5[%c0_45, %c0_46] : memref<128x384xf32, #tpu.memory_space<vmem>>, vector<128x384xf32>
    %cst_47 = arith.constant dense<0.000000e+00> : vector<8x384xf32>
    %96 = tpu.matmul %91, %95, %cst_47 {dimension_numbers = #tpu.dot_dimension_numbers<[1], [0], [0], [1], [0, 0, 1, 1], [], []>} : vector<8x128xf32>, vector<128x384xf32>, vector<8x384xf32> -> vector<8x384xf32>
    %97 = vector.extract_strided_slice %94 {offsets = [0, 0], sizes = [8, 128], strides = [1, 1]} : vector<8x384xf32> to vector<8x128xf32>
    %98 = vector.extract_strided_slice %96 {offsets = [0, 0], sizes = [8, 128], strides = [1, 1]} : vector<8x384xf32> to vector<8x128xf32>
    %99 = arith.addf %97, %98 : vector<8x128xf32>
    %100 = arith.negf %99 : vector<8x128xf32>
    %101 = math.exp %100 : vector<8x128xf32>
    %cst_48 = arith.constant 1.000000e+00 : f32
    %102 = vector.broadcast %cst_48 : f32 to vector<8x128xf32>
    %103 = arith.addf %102, %101 : vector<8x128xf32>
    %104 = arith.divf %102, %103 : vector<8x128xf32>
    %105 = vector.extract_strided_slice %94 {offsets = [0, 128], sizes = [8, 128], strides = [1, 1]} : vector<8x384xf32> to vector<8x128xf32>
    %106 = vector.extract_strided_slice %96 {offsets = [0, 128], sizes = [8, 128], strides = [1, 1]} : vector<8x384xf32> to vector<8x128xf32>
    %107 = arith.addf %105, %106 : vector<8x128xf32>
    %108 = arith.negf %107 : vector<8x128xf32>
    %109 = math.exp %108 : vector<8x128xf32>
    %cst_49 = arith.constant 1.000000e+00 : f32
    %110 = vector.broadcast %cst_49 : f32 to vector<8x128xf32>
    %111 = arith.addf %110, %109 : vector<8x128xf32>
    %112 = arith.divf %110, %111 : vector<8x128xf32>
    %113 = vector.extract_strided_slice %94 {offsets = [0, 256], sizes = [8, 128], strides = [1, 1]} : vector<8x384xf32> to vector<8x128xf32>
    %114 = vector.extract_strided_slice %96 {offsets = [0, 256], sizes = [8, 128], strides = [1, 1]} : vector<8x384xf32> to vector<8x128xf32>
    %115 = arith.addf %114, %14 : vector<8x128xf32>
    %116 = arith.mulf %104, %115 : vector<8x128xf32>
    %117 = arith.addf %113, %116 : vector<8x128xf32>
    %118 = math.tanh %117 : vector<8x128xf32>
    %cst_50 = arith.constant 1.000000e+00 : f32
    %119 = vector.broadcast %cst_50 : f32 to vector<8x128xf32>
    %120 = arith.subf %119, %112 : vector<8x128xf32>
    %121 = arith.mulf %120, %118 : vector<8x128xf32>
    %122 = arith.mulf %112, %91 : vector<8x128xf32>
    %123 = arith.addf %121, %122 : vector<8x128xf32>
    %c0_51 = arith.constant 0 : index
    %c0_52 = arith.constant 0 : index
    %124 = vector.load %arg9[%c0_51, %c0_52] : memref<8x128xf32, #tpu.memory_space<vmem>>, vector<8x128xf32>
    tpu.vector_store %arg9[%c0_51, %c0_52], %123 {strides = array<i32>} : memref<8x128xf32, #tpu.memory_space<vmem>>, vector<8x128xf32>,
    %125 = arith.index_cast %c2_i32 : i32 to index
    %c0_53 = arith.constant 0 : index
    %c0_54 = arith.constant 0 : index
    %126 = vector.load %arg7[%125, %c0_53, %c0_54] : memref<8x8x128xf32, #tpu.memory_space<vmem>>, vector<1x8x128xf32>
    %127 = vector.shape_cast %126 : vector<1x8x128xf32> to vector<8x128xf32>
    %128 = vector.shape_cast %123 : vector<8x128xf32> to vector<1x8x128xf32>
    tpu.vector_store %arg7[%125, %c0_53, %c0_54], %128 {strides = array<i32>} : memref<8x8x128xf32, #tpu.memory_space<vmem>>, vector<1x8x128xf32>,
    %c3_i32 = arith.constant 3 : i32
    %c0_55 = arith.constant 0 : index
    %c0_56 = arith.constant 0 : index
    %129 = vector.load %arg9[%c0_55, %c0_56] : memref<8x128xf32, #tpu.memory_space<vmem>>, vector<8x128xf32>
    %130 = arith.index_cast %c3_i32 : i32 to index
    %c0_57 = arith.constant 0 : index
    %c0_58 = arith.constant 0 : index
    %131 = vector.load %arg8[%130, %c0_57, %c0_58] : memref<8x8x384xf32, #tpu.memory_space<vmem>>, vector<1x8x384xf32>
    %132 = vector.shape_cast %131 : vector<1x8x384xf32> to vector<8x384xf32>
    %c0_59 = arith.constant 0 : index
    %c0_60 = arith.constant 0 : index
    %133 = vector.load %arg5[%c0_59, %c0_60] : memref<128x384xf32, #tpu.memory_space<vmem>>, vector<128x384xf32>
    %cst_61 = arith.constant dense<0.000000e+00> : vector<8x384xf32>
    %134 = tpu.matmul %129, %133, %cst_61 {dimension_numbers = #tpu.dot_dimension_numbers<[1], [0], [0], [1], [0, 0, 1, 1], [], []>} : vector<8x128xf32>, vector<128x384xf32>, vector<8x384xf32> -> vector<8x384xf32>
    %135 = vector.extract_strided_slice %132 {offsets = [0, 0], sizes = [8, 128], strides = [1, 1]} : vector<8x384xf32> to vector<8x128xf32>
    %136 = vector.extract_strided_slice %134 {offsets = [0, 0], sizes = [8, 128], strides = [1, 1]} : vector<8x384xf32> to vector<8x128xf32>
    %137 = arith.addf %135, %136 : vector<8x128xf32>
    %138 = arith.negf %137 : vector<8x128xf32>
    %139 = math.exp %138 : vector<8x128xf32>
    %cst_62 = arith.constant 1.000000e+00 : f32
    %140 = vector.broadcast %cst_62 : f32 to vector<8x128xf32>
    %141 = arith.addf %140, %139 : vector<8x128xf32>
    %142 = arith.divf %140, %141 : vector<8x128xf32>
    %143 = vector.extract_strided_slice %132 {offsets = [0, 128], sizes = [8, 128], strides = [1, 1]} : vector<8x384xf32> to vector<8x128xf32>
    %144 = vector.extract_strided_slice %134 {offsets = [0, 128], sizes = [8, 128], strides = [1, 1]} : vector<8x384xf32> to vector<8x128xf32>
    %145 = arith.addf %143, %144 : vector<8x128xf32>
    %146 = arith.negf %145 : vector<8x128xf32>
    %147 = math.exp %146 : vector<8x128xf32>
    %cst_63 = arith.constant 1.000000e+00 : f32
    %148 = vector.broadcast %cst_63 : f32 to vector<8x128xf32>
    %149 = arith.addf %148, %147 : vector<8x128xf32>
    %150 = arith.divf %148, %149 : vector<8x128xf32>
    %151 = vector.extract_strided_slice %132 {offsets = [0, 256], sizes = [8, 128], strides = [1, 1]} : vector<8x384xf32> to vector<8x128xf32>
    %152 = vector.extract_strided_slice %134 {offsets = [0, 256], sizes = [8, 128], strides = [1, 1]} : vector<8x384xf32> to vector<8x128xf32>
    %153 = arith.addf %152, %14 : vector<8x128xf32>
    %154 = arith.mulf %142, %153 : vector<8x128xf32>
    %155 = arith.addf %151, %154 : vector<8x128xf32>
    %156 = math.tanh %155 : vector<8x128xf32>
    %cst_64 = arith.constant 1.000000e+00 : f32
    %157 = vector.broadcast %cst_64 : f32 to vector<8x128xf32>
    %158 = arith.subf %157, %150 : vector<8x128xf32>
    %159 = arith.mulf %158, %156 : vector<8x128xf32>
    %160 = arith.mulf %150, %129 : vector<8x128xf32>
    %161 = arith.addf %159, %160 : vector<8x128xf32>
    %c0_65 = arith.constant 0 : index
    %c0_66 = arith.constant 0 : index
    %162 = vector.load %arg9[%c0_65, %c0_66] : memref<8x128xf32, #tpu.memory_space<vmem>>, vector<8x128xf32>
    tpu.vector_store %arg9[%c0_65, %c0_66], %161 {strides = array<i32>} : memref<8x128xf32, #tpu.memory_space<vmem>>, vector<8x128xf32>,
    %163 = arith.index_cast %c3_i32 : i32 to index
    %c0_67 = arith.constant 0 : index
    %c0_68 = arith.constant 0 : index
    %164 = vector.load %arg7[%163, %c0_67, %c0_68] : memref<8x8x128xf32, #tpu.memory_space<vmem>>, vector<1x8x128xf32>
    %165 = vector.shape_cast %164 : vector<1x8x128xf32> to vector<8x128xf32>
    %166 = vector.shape_cast %161 : vector<8x128xf32> to vector<1x8x128xf32>
    tpu.vector_store %arg7[%163, %c0_67, %c0_68], %166 {strides = array<i32>} : memref<8x8x128xf32, #tpu.memory_space<vmem>>, vector<1x8x128xf32>,
    %c4_i32 = arith.constant 4 : i32
    %c0_69 = arith.constant 0 : index
    %c0_70 = arith.constant 0 : index
    %167 = vector.load %arg9[%c0_69, %c0_70] : memref<8x128xf32, #tpu.memory_space<vmem>>, vector<8x128xf32>
    %168 = arith.index_cast %c4_i32 : i32 to index
    %c0_71 = arith.constant 0 : index
    %c0_72 = arith.constant 0 : index
    %169 = vector.load %arg8[%168, %c0_71, %c0_72] : memref<8x8x384xf32, #tpu.memory_space<vmem>>, vector<1x8x384xf32>
    %170 = vector.shape_cast %169 : vector<1x8x384xf32> to vector<8x384xf32>
    %c0_73 = arith.constant 0 : index
    %c0_74 = arith.constant 0 : index
    %171 = vector.load %arg5[%c0_73, %c0_74] : memref<128x384xf32, #tpu.memory_space<vmem>>, vector<128x384xf32>
    %cst_75 = arith.constant dense<0.000000e+00> : vector<8x384xf32>
    %172 = tpu.matmul %167, %171, %cst_75 {dimension_numbers = #tpu.dot_dimension_numbers<[1], [0], [0], [1], [0, 0, 1, 1], [], []>} : vector<8x128xf32>, vector<128x384xf32>, vector<8x384xf32> -> vector<8x384xf32>
    %173 = vector.extract_strided_slice %170 {offsets = [0, 0], sizes = [8, 128], strides = [1, 1]} : vector<8x384xf32> to vector<8x128xf32>
    %174 = vector.extract_strided_slice %172 {offsets = [0, 0], sizes = [8, 128], strides = [1, 1]} : vector<8x384xf32> to vector<8x128xf32>
    %175 = arith.addf %173, %174 : vector<8x128xf32>
    %176 = arith.negf %175 : vector<8x128xf32>
    %177 = math.exp %176 : vector<8x128xf32>
    %cst_76 = arith.constant 1.000000e+00 : f32
    %178 = vector.broadcast %cst_76 : f32 to vector<8x128xf32>
    %179 = arith.addf %178, %177 : vector<8x128xf32>
    %180 = arith.divf %178, %179 : vector<8x128xf32>
    %181 = vector.extract_strided_slice %170 {offsets = [0, 128], sizes = [8, 128], strides = [1, 1]} : vector<8x384xf32> to vector<8x128xf32>
    %182 = vector.extract_strided_slice %172 {offsets = [0, 128], sizes = [8, 128], strides = [1, 1]} : vector<8x384xf32> to vector<8x128xf32>
    %183 = arith.addf %181, %182 : vector<8x128xf32>
    %184 = arith.negf %183 : vector<8x128xf32>
    %185 = math.exp %184 : vector<8x128xf32>
    %cst_77 = arith.constant 1.000000e+00 : f32
    %186 = vector.broadcast %cst_77 : f32 to vector<8x128xf32>
    %187 = arith.addf %186, %185 : vector<8x128xf32>
    %188 = arith.divf %186, %187 : vector<8x128xf32>
    %189 = vector.extract_strided_slice %170 {offsets = [0, 256], sizes = [8, 128], strides = [1, 1]} : vector<8x384xf32> to vector<8x128xf32>
    %190 = vector.extract_strided_slice %172 {offsets = [0, 256], sizes = [8, 128], strides = [1, 1]} : vector<8x384xf32> to vector<8x128xf32>
    %191 = arith.addf %190, %14 : vector<8x128xf32>
    %192 = arith.mulf %180, %191 : vector<8x128xf32>
    %193 = arith.addf %189, %192 : vector<8x128xf32>
    %194 = math.tanh %193 : vector<8x128xf32>
    %cst_78 = arith.constant 1.000000e+00 : f32
    %195 = vector.broadcast %cst_78 : f32 to vector<8x128xf32>
    %196 = arith.subf %195, %188 : vector<8x128xf32>
    %197 = arith.mulf %196, %194 : vector<8x128xf32>
    %198 = arith.mulf %188, %167 : vector<8x128xf32>
    %199 = arith.addf %197, %198 : vector<8x128xf32>
    %c0_79 = arith.constant 0 : index
    %c0_80 = arith.constant 0 : index
    %200 = vector.load %arg9[%c0_79, %c0_80] : memref<8x128xf32, #tpu.memory_space<vmem>>, vector<8x128xf32>
    tpu.vector_store %arg9[%c0_79, %c0_80], %199 {strides = array<i32>} : memref<8x128xf32, #tpu.memory_space<vmem>>, vector<8x128xf32>,
    %201 = arith.index_cast %c4_i32 : i32 to index
    %c0_81 = arith.constant 0 : index
    %c0_82 = arith.constant 0 : index
    %202 = vector.load %arg7[%201, %c0_81, %c0_82] : memref<8x8x128xf32, #tpu.memory_space<vmem>>, vector<1x8x128xf32>
    %203 = vector.shape_cast %202 : vector<1x8x128xf32> to vector<8x128xf32>
    %204 = vector.shape_cast %199 : vector<8x128xf32> to vector<1x8x128xf32>
    tpu.vector_store %arg7[%201, %c0_81, %c0_82], %204 {strides = array<i32>} : memref<8x8x128xf32, #tpu.memory_space<vmem>>, vector<1x8x128xf32>,
    %c5_i32 = arith.constant 5 : i32
    %c0_83 = arith.constant 0 : index
    %c0_84 = arith.constant 0 : index
    %205 = vector.load %arg9[%c0_83, %c0_84] : memref<8x128xf32, #tpu.memory_space<vmem>>, vector<8x128xf32>
    %206 = arith.index_cast %c5_i32 : i32 to index
    %c0_85 = arith.constant 0 : index
    %c0_86 = arith.constant 0 : index
    %207 = vector.load %arg8[%206, %c0_85, %c0_86] : memref<8x8x384xf32, #tpu.memory_space<vmem>>, vector<1x8x384xf32>
    %208 = vector.shape_cast %207 : vector<1x8x384xf32> to vector<8x384xf32>
    %c0_87 = arith.constant 0 : index
    %c0_88 = arith.constant 0 : index
    %209 = vector.load %arg5[%c0_87, %c0_88] : memref<128x384xf32, #tpu.memory_space<vmem>>, vector<128x384xf32>
    %cst_89 = arith.constant dense<0.000000e+00> : vector<8x384xf32>
    %210 = tpu.matmul %205, %209, %cst_89 {dimension_numbers = #tpu.dot_dimension_numbers<[1], [0], [0], [1], [0, 0, 1, 1], [], []>} : vector<8x128xf32>, vector<128x384xf32>, vector<8x384xf32> -> vector<8x384xf32>
    %211 = vector.extract_strided_slice %208 {offsets = [0, 0], sizes = [8, 128], strides = [1, 1]} : vector<8x384xf32> to vector<8x128xf32>
    %212 = vector.extract_strided_slice %210 {offsets = [0, 0], sizes = [8, 128], strides = [1, 1]} : vector<8x384xf32> to vector<8x128xf32>
    %213 = arith.addf %211, %212 : vector<8x128xf32>
    %214 = arith.negf %213 : vector<8x128xf32>
    %215 = math.exp %214 : vector<8x128xf32>
    %cst_90 = arith.constant 1.000000e+00 : f32
    %216 = vector.broadcast %cst_90 : f32 to vector<8x128xf32>
    %217 = arith.addf %216, %215 : vector<8x128xf32>
    %218 = arith.divf %216, %217 : vector<8x128xf32>
    %219 = vector.extract_strided_slice %208 {offsets = [0, 128], sizes = [8, 128], strides = [1, 1]} : vector<8x384xf32> to vector<8x128xf32>
    %220 = vector.extract_strided_slice %210 {offsets = [0, 128], sizes = [8, 128], strides = [1, 1]} : vector<8x384xf32> to vector<8x128xf32>
    %221 = arith.addf %219, %220 : vector<8x128xf32>
    %222 = arith.negf %221 : vector<8x128xf32>
    %223 = math.exp %222 : vector<8x128xf32>
    %cst_91 = arith.constant 1.000000e+00 : f32
    %224 = vector.broadcast %cst_91 : f32 to vector<8x128xf32>
    %225 = arith.addf %224, %223 : vector<8x128xf32>
    %226 = arith.divf %224, %225 : vector<8x128xf32>
    %227 = vector.extract_strided_slice %208 {offsets = [0, 256], sizes = [8, 128], strides = [1, 1]} : vector<8x384xf32> to vector<8x128xf32>
    %228 = vector.extract_strided_slice %210 {offsets = [0, 256], sizes = [8, 128], strides = [1, 1]} : vector<8x384xf32> to vector<8x128xf32>
    %229 = arith.addf %228, %14 : vector<8x128xf32>
    %230 = arith.mulf %218, %229 : vector<8x128xf32>
    %231 = arith.addf %227, %230 : vector<8x128xf32>
    %232 = math.tanh %231 : vector<8x128xf32>
    %cst_92 = arith.constant 1.000000e+00 : f32
    %233 = vector.broadcast %cst_92 : f32 to vector<8x128xf32>
    %234 = arith.subf %233, %226 : vector<8x128xf32>
    %235 = arith.mulf %234, %232 : vector<8x128xf32>
    %236 = arith.mulf %226, %205 : vector<8x128xf32>
    %237 = arith.addf %235, %236 : vector<8x128xf32>
    %c0_93 = arith.constant 0 : index
    %c0_94 = arith.constant 0 : index
    %238 = vector.load %arg9[%c0_93, %c0_94] : memref<8x128xf32, #tpu.memory_space<vmem>>, vector<8x128xf32>
    tpu.vector_store %arg9[%c0_93, %c0_94], %237 {strides = array<i32>} : memref<8x128xf32, #tpu.memory_space<vmem>>, vector<8x128xf32>,
    %239 = arith.index_cast %c5_i32 : i32 to index
    %c0_95 = arith.constant 0 : index
    %c0_96 = arith.constant 0 : index
    %240 = vector.load %arg7[%239, %c0_95, %c0_96] : memref<8x8x128xf32, #tpu.memory_space<vmem>>, vector<1x8x128xf32>
    %241 = vector.shape_cast %240 : vector<1x8x128xf32> to vector<8x128xf32>
    %242 = vector.shape_cast %237 : vector<8x128xf32> to vector<1x8x128xf32>
    tpu.vector_store %arg7[%239, %c0_95, %c0_96], %242 {strides = array<i32>} : memref<8x8x128xf32, #tpu.memory_space<vmem>>, vector<1x8x128xf32>,
    %c6_i32 = arith.constant 6 : i32
    %c0_97 = arith.constant 0 : index
    %c0_98 = arith.constant 0 : index
    %243 = vector.load %arg9[%c0_97, %c0_98] : memref<8x128xf32, #tpu.memory_space<vmem>>, vector<8x128xf32>
    %244 = arith.index_cast %c6_i32 : i32 to index
    %c0_99 = arith.constant 0 : index
    %c0_100 = arith.constant 0 : index
    %245 = vector.load %arg8[%244, %c0_99, %c0_100] : memref<8x8x384xf32, #tpu.memory_space<vmem>>, vector<1x8x384xf32>
    %246 = vector.shape_cast %245 : vector<1x8x384xf32> to vector<8x384xf32>
    %c0_101 = arith.constant 0 : index
    %c0_102 = arith.constant 0 : index
    %247 = vector.load %arg5[%c0_101, %c0_102] : memref<128x384xf32, #tpu.memory_space<vmem>>, vector<128x384xf32>
    %cst_103 = arith.constant dense<0.000000e+00> : vector<8x384xf32>
    %248 = tpu.matmul %243, %247, %cst_103 {dimension_numbers = #tpu.dot_dimension_numbers<[1], [0], [0], [1], [0, 0, 1, 1], [], []>} : vector<8x128xf32>, vector<128x384xf32>, vector<8x384xf32> -> vector<8x384xf32>
    %249 = vector.extract_strided_slice %246 {offsets = [0, 0], sizes = [8, 128], strides = [1, 1]} : vector<8x384xf32> to vector<8x128xf32>
    %250 = vector.extract_strided_slice %248 {offsets = [0, 0], sizes = [8, 128], strides = [1, 1]} : vector<8x384xf32> to vector<8x128xf32>
    %251 = arith.addf %249, %250 : vector<8x128xf32>
    %252 = arith.negf %251 : vector<8x128xf32>
    %253 = math.exp %252 : vector<8x128xf32>
    %cst_104 = arith.constant 1.000000e+00 : f32
    %254 = vector.broadcast %cst_104 : f32 to vector<8x128xf32>
    %255 = arith.addf %254, %253 : vector<8x128xf32>
    %256 = arith.divf %254, %255 : vector<8x128xf32>
    %257 = vector.extract_strided_slice %246 {offsets = [0, 128], sizes = [8, 128], strides = [1, 1]} : vector<8x384xf32> to vector<8x128xf32>
    %258 = vector.extract_strided_slice %248 {offsets = [0, 128], sizes = [8, 128], strides = [1, 1]} : vector<8x384xf32> to vector<8x128xf32>
    %259 = arith.addf %257, %258 : vector<8x128xf32>
    %260 = arith.negf %259 : vector<8x128xf32>
    %261 = math.exp %260 : vector<8x128xf32>
    %cst_105 = arith.constant 1.000000e+00 : f32
    %262 = vector.broadcast %cst_105 : f32 to vector<8x128xf32>
    %263 = arith.addf %262, %261 : vector<8x128xf32>
    %264 = arith.divf %262, %263 : vector<8x128xf32>
    %265 = vector.extract_strided_slice %246 {offsets = [0, 256], sizes = [8, 128], strides = [1, 1]} : vector<8x384xf32> to vector<8x128xf32>
    %266 = vector.extract_strided_slice %248 {offsets = [0, 256], sizes = [8, 128], strides = [1, 1]} : vector<8x384xf32> to vector<8x128xf32>
    %267 = arith.addf %266, %14 : vector<8x128xf32>
    %268 = arith.mulf %256, %267 : vector<8x128xf32>
    %269 = arith.addf %265, %268 : vector<8x128xf32>
    %270 = math.tanh %269 : vector<8x128xf32>
    %cst_106 = arith.constant 1.000000e+00 : f32
    %271 = vector.broadcast %cst_106 : f32 to vector<8x128xf32>
    %272 = arith.subf %271, %264 : vector<8x128xf32>
    %273 = arith.mulf %272, %270 : vector<8x128xf32>
    %274 = arith.mulf %264, %243 : vector<8x128xf32>
    %275 = arith.addf %273, %274 : vector<8x128xf32>
    %c0_107 = arith.constant 0 : index
    %c0_108 = arith.constant 0 : index
    %276 = vector.load %arg9[%c0_107, %c0_108] : memref<8x128xf32, #tpu.memory_space<vmem>>, vector<8x128xf32>
    tpu.vector_store %arg9[%c0_107, %c0_108], %275 {strides = array<i32>} : memref<8x128xf32, #tpu.memory_space<vmem>>, vector<8x128xf32>,
    %277 = arith.index_cast %c6_i32 : i32 to index
    %c0_109 = arith.constant 0 : index
    %c0_110 = arith.constant 0 : index
    %278 = vector.load %arg7[%277, %c0_109, %c0_110] : memref<8x8x128xf32, #tpu.memory_space<vmem>>, vector<1x8x128xf32>
    %279 = vector.shape_cast %278 : vector<1x8x128xf32> to vector<8x128xf32>
    %280 = vector.shape_cast %275 : vector<8x128xf32> to vector<1x8x128xf32>
    tpu.vector_store %arg7[%277, %c0_109, %c0_110], %280 {strides = array<i32>} : memref<8x8x128xf32, #tpu.memory_space<vmem>>, vector<1x8x128xf32>,
    %c7_i32 = arith.constant 7 : i32
    %c0_111 = arith.constant 0 : index
    %c0_112 = arith.constant 0 : index
    %281 = vector.load %arg9[%c0_111, %c0_112] : memref<8x128xf32, #tpu.memory_space<vmem>>, vector<8x128xf32>
    %282 = arith.index_cast %c7_i32 : i32 to index
    %c0_113 = arith.constant 0 : index
    %c0_114 = arith.constant 0 : index
    %283 = vector.load %arg8[%282, %c0_113, %c0_114] : memref<8x8x384xf32, #tpu.memory_space<vmem>>, vector<1x8x384xf32>
    %284 = vector.shape_cast %283 : vector<1x8x384xf32> to vector<8x384xf32>
    %c0_115 = arith.constant 0 : index
    %c0_116 = arith.constant 0 : index
    %285 = vector.load %arg5[%c0_115, %c0_116] : memref<128x384xf32, #tpu.memory_space<vmem>>, vector<128x384xf32>
    %cst_117 = arith.constant dense<0.000000e+00> : vector<8x384xf32>
    %286 = tpu.matmul %281, %285, %cst_117 {dimension_numbers = #tpu.dot_dimension_numbers<[1], [0], [0], [1], [0, 0, 1, 1], [], []>} : vector<8x128xf32>, vector<128x384xf32>, vector<8x384xf32> -> vector<8x384xf32>
    %287 = vector.extract_strided_slice %284 {offsets = [0, 0], sizes = [8, 128], strides = [1, 1]} : vector<8x384xf32> to vector<8x128xf32>
    %288 = vector.extract_strided_slice %286 {offsets = [0, 0], sizes = [8, 128], strides = [1, 1]} : vector<8x384xf32> to vector<8x128xf32>
    %289 = arith.addf %287, %288 : vector<8x128xf32>
    %290 = arith.negf %289 : vector<8x128xf32>
    %291 = math.exp %290 : vector<8x128xf32>
    %cst_118 = arith.constant 1.000000e+00 : f32
    %292 = vector.broadcast %cst_118 : f32 to vector<8x128xf32>
    %293 = arith.addf %292, %291 : vector<8x128xf32>
    %294 = arith.divf %292, %293 : vector<8x128xf32>
    %295 = vector.extract_strided_slice %284 {offsets = [0, 128], sizes = [8, 128], strides = [1, 1]} : vector<8x384xf32> to vector<8x128xf32>
    %296 = vector.extract_strided_slice %286 {offsets = [0, 128], sizes = [8, 128], strides = [1, 1]} : vector<8x384xf32> to vector<8x128xf32>
    %297 = arith.addf %295, %296 : vector<8x128xf32>
    %298 = arith.negf %297 : vector<8x128xf32>
    %299 = math.exp %298 : vector<8x128xf32>
    %cst_119 = arith.constant 1.000000e+00 : f32
    %300 = vector.broadcast %cst_119 : f32 to vector<8x128xf32>
    %301 = arith.addf %300, %299 : vector<8x128xf32>
    %302 = arith.divf %300, %301 : vector<8x128xf32>
    %303 = vector.extract_strided_slice %284 {offsets = [0, 256], sizes = [8, 128], strides = [1, 1]} : vector<8x384xf32> to vector<8x128xf32>
    %304 = vector.extract_strided_slice %286 {offsets = [0, 256], sizes = [8, 128], strides = [1, 1]} : vector<8x384xf32> to vector<8x128xf32>
    %305 = arith.addf %304, %14 : vector<8x128xf32>
    %306 = arith.mulf %294, %305 : vector<8x128xf32>
    %307 = arith.addf %303, %306 : vector<8x128xf32>
    %308 = math.tanh %307 : vector<8x128xf32>
    %cst_120 = arith.constant 1.000000e+00 : f32
    %309 = vector.broadcast %cst_120 : f32 to vector<8x128xf32>
    %310 = arith.subf %309, %302 : vector<8x128xf32>
    %311 = arith.mulf %310, %308 : vector<8x128xf32>
    %312 = arith.mulf %302, %281 : vector<8x128xf32>
    %313 = arith.addf %311, %312 : vector<8x128xf32>
    %c0_121 = arith.constant 0 : index
    %c0_122 = arith.constant 0 : index
    %314 = vector.load %arg9[%c0_121, %c0_122] : memref<8x128xf32, #tpu.memory_space<vmem>>, vector<8x128xf32>
    tpu.vector_store %arg9[%c0_121, %c0_122], %313 {strides = array<i32>} : memref<8x128xf32, #tpu.memory_space<vmem>>, vector<8x128xf32>,
    %315 = arith.index_cast %c7_i32 : i32 to index
    %c0_123 = arith.constant 0 : index
    %c0_124 = arith.constant 0 : index
    %316 = vector.load %arg7[%315, %c0_123, %c0_124] : memref<8x8x128xf32, #tpu.memory_space<vmem>>, vector<1x8x128xf32>
    %317 = vector.shape_cast %316 : vector<1x8x128xf32> to vector<8x128xf32>
    %318 = vector.shape_cast %313 : vector<8x128xf32> to vector<1x8x128xf32>
    tpu.vector_store %arg7[%315, %c0_123, %c0_124], %318 {strides = array<i32>} : memref<8x8x128xf32, #tpu.memory_space<vmem>>, vector<1x8x128xf32>,
    %c8_i32 = arith.constant 8 : i32
    return
  }
  func.func @transform_0(%arg0: i32, %arg1: i32) -> (i32, i32, i32) {
    %c0_i32 = arith.constant 0 : i32
    %c0_i32_0 = arith.constant 0 : i32
    return %arg1, %arg0, %c0_i32 : i32, i32, i32
  }
  func.func @transform_1(%arg0: i32, %arg1: i32) -> (i32, i32) {
    %c0_i32 = arith.constant 0 : i32
    %c0_i32_0 = arith.constant 0 : i32
    %c0_i32_1 = arith.constant 0 : i32
    return %c0_i32, %c0_i32_0 : i32, i32
  }
  func.func @transform_2(%arg0: i32, %arg1: i32) -> (i32, i32) {
    %c0_i32 = arith.constant 0 : i32
    %c0_i32_0 = arith.constant 0 : i32
    %c0_i32_1 = arith.constant 0 : i32
    return %c0_i32, %c0_i32_0 : i32, i32
  }
  func.func @transform_3(%arg0: i32, %arg1: i32) -> (i32, i32) {
    %c0_i32 = arith.constant 0 : i32
    %c0_i32_0 = arith.constant 0 : i32
    %c0_i32_1 = arith.constant 0 : i32
    return %c0_i32, %c0_i32_0 : i32, i32
  }
  func.func @transform_4(%arg0: i32, %arg1: i32) -> (i32, i32) {
    %c0_i32 = arith.constant 0 : i32
    %c0_i32_0 = arith.constant 0 : i32
    %c0_i32_1 = arith.constant 0 : i32
    return %c0_i32, %c0_i32_0 : i32, i32
  }
  func.func @transform_5(%arg0: i32, %arg1: i32) -> (i32, i32, i32) {
    %c0_i32 = arith.constant 0 : i32
    %c0_i32_0 = arith.constant 0 : i32
    return %arg1, %arg0, %c0_i32 : i32, i32, i32
  }
}

</mosaic_0001>

<bundles_post_ra>
// kernel: tpu_custom_call.1
= control target key start
LH: loop header
LB: loop body
LE: loop exit
PB: predicated region body
PF: predicated region fallthrough
CT: control target
= control target key end

     0   :  { %10 = vsyncpa [#allocation5], 0  ;;  %s2712_s0 = inlined_call_operand.hbm [shape: f32[8,8,16], index: 0, kind: input, shape index: {}]   ;;  %s2713_s1 = inlined_call_operand.hbm [shape: f32[16,384], index: 1, kind: input, shape index: {}]   ;;  %s2714_s2 = inlined_call_operand.hbm [shape: f32[1,384], index: 2, kind: input, shape index: {}]   ;;  %s2715_s3 = inlined_call_operand.hbm [shape: f32[128,384], index: 3, kind: input, shape index: {}]   ;;  %s2716_s4 = inlined_call_operand.vmem [shape: f32[1,128], index: 4, kind: input, shape index: {}]   ;;  %s2717_s5 = inlined_call_operand.hbm [shape: f32[8,8,128], index: 5, kind: output, shape index: {}]  }
   0x1   :  { %11 = vsyncpa [#allocation8], 0 }
   0x2   :  { %12 = vsyncpa [#allocation11], 0  ;;  %s31_s20 = sshll.u32 %s2713_s1, 4  ;;  %s32_s20 = int_to_ptr.hbm [resolvable:$true] %s31_s20 }
   0x3   :  { %13 = vsyncpa [#allocation6], 0  ;;  %s1880_s21 = smov [#allocation7]   ;;  %s18_s25 = sshll.u32 %s2712_s0, 4  ;;  %s19_s25 = int_to_ptr.hbm [resolvable:$true] %s18_s25 }
   0x4   :  { %s33_s22 = sshll.u32 %s1880_s21, 4  ;;  %s1881_s26 = smov 384   ;;  %s34_s22 = int_to_ptr.vmem [resolvable:$true] %s33_s22 }
   0x5   :  { %s1882_s27 = smov 24   ;;  %s1883_s28 = smov [#allocation4]  }
   0x6   :  { %39 = dma.hbm_to_vmem [thread:$0]  %s32_s20, 768, %s34_s22, [#allocation8], %s1881_s26, %s1881_s26, %s1882_s27  }
   0x7   :  { %s20_s29 = sshll.u32 %s1883_s28, 4  ;;  %s1884_s30 = smov 128   ;;  %s21_s29 = int_to_ptr.vmem [resolvable:$true] %s20_s29 }
   0x8   :  { %s1885_s6 = smov 8   ;;  %s45_s8 = sshll.u32 %s2714_s2, 4  ;;  %s46_s8 = int_to_ptr.hbm [resolvable:$true] %s45_s8 }
   0x9   :  { %26 = dma.hbm_to_vmem [thread:$0]  %s19_s25, 1024, %s21_s29, [#allocation5], %s1884_s30, %s1884_s30, %s1885_s6  }
   0xa   :  { %s1886_s9 = smov [#allocation9]   ;;  %s55_s12 = sshll.u32 %s2715_s3, 4  ;;  %s56_s12 = int_to_ptr.hbm [resolvable:$true] %s55_s12 }
   0xb   :  { %s47_s0 = sshll.u32 %s1886_s9, 4  ;;  %s1887_s13 = smov [#allocation10]   ;;  %s48_s0 = int_to_ptr.vmem [resolvable:$true] %s47_s0 }
   0xc   :  { %50 = dma.hbm_to_vmem [thread:$0]  %s46_s8, 48, %s48_s0, [#allocation8]  }
   0xd   :  { %s57_s14 = sshll.u32 %s1887_s13, 4  ;;  %s58_s14 = int_to_ptr.vmem [resolvable:$true] %s57_s14 }
   0xe   :  { %63 = dma.hbm_to_vmem [thread:$0]  %s56_s12, 6144, %s58_s14, [#allocation11], %s1881_s26, %s1881_s26, %s1882_s27  }
   0xf   :  { %1872 = dma.done.wait [#allocation5], 1024  }
  0x10   :  { %1873 = vsyncadd [#allocation5], 4294966272 }
  0x11   :  { %1874 = dma.done.wait [#allocation8], 816  }
  0x12   :  { %1875 = vsyncadd [#allocation8], 4294966480 }
  0x13   :  { %1876 = dma.done.wait [#allocation11], 6144  }
  0x14   :  { %1877 = vsyncadd [#allocation11], 4294961152  ;;  %v1935_v0 = vld [vmem:[#allocation10 + $0x168] sm:$0xff]  ;;  %v1937_v1 = vld [vmem:[#allocation10 + $0x150] sm:$0xff]  ;;  %vm109_vm0 = vcmask 130048   ;;  %v1888_v42 = vmov 0.0  }
  0x15   :  { %337 = vmatpush.msra.mxu3 %v1935_v0  ;;  %v98_v2 = vld [vmem:[#allocation7 + $0x18] sm:$0xff]  ;;  %v95_v3 = vld [vmem:[#allocation7] sm:$0xff]  ;;  %v1940_v4 = vld [vmem:[#allocation10 + $0x138] sm:$0xff]  ;;  %s1601_s20 = sshll.u32 %s2717_s5, 4  ;;  %s1602_s20 = int_to_ptr.hbm [resolvable:$true] %s1601_s20 }
  0x16   :  { %148 = vmatpush.msra.mxu0 %v98_v2  ;;  %v1942_v5 = vld [vmem:[#allocation4] sm:$0xff]  ;;  %1656 = vmatpush.msra.mxu2 %v98_v2  ;;  %v1945_v6 = vld [vmem:[#allocation10 + $0x120] sm:$0xff]  ;;  %v1953_v8 = vld [vmem:[#allocation10 + $0x178] sm:$0xff] }
  0x17   :  { %338 = vmatpush.msra.mxu3 %v1937_v1  ;;  %v1950_v7 = vld [vmem:[#allocation10 + $0x108] sm:$0xff]  ;;  %v1955_v9 = vld [vmem:[#allocation10 + $0xf0] sm:$0xff]  ;;  %v1958_v10 = vld [vmem:[#allocation10 + $0x160] sm:$0xff] }
  0x18   :  { %149 = vmatpush.msra.mxu0 %v95_v3  ;;  %1657 = vmatpush.msra.mxu2 %v95_v3  ;;  %v1961_v11 = vld [vmem:[#allocation10 + $0x148] sm:$0xff]  ;;  %v1963_v12 = vld [vmem:[#allocation10 + $0xd8] sm:$0xff]  ;;  %v1969_v14 = vld [vmem:[#allocation10 + $0x130] sm:$0xff] }
  0x19   :  { %339 = vmatpush.msra.mxu3 %v1940_v4  ;;  %1616 = vmatmul.msk.f32.vlgmr.msra.gmra.mxu0 %vm109_vm0, %v1942_v5  ;;  %v1965_v13 = vld [vmem:[#allocation4 + $0x8] sm:$0xff]  ;;  %v1971_v15 = vld [vmem:[#allocation10 + $0xc0] sm:$0xff]  ;;  %v1981_v18 = vld [vmem:[#allocation10 + $0xa8] sm:$0xff] }
  0x1a   :  { %377 = vmatpush.msrb.mxu0 %v1953_v8  ;;  %v1977_v16 = vld [vmem:[#allocation10 + $0x118] sm:$0xff]  ;;  %v1979_v17 = vld [vmem:[#allocation4 + $0x38] sm:$0xff]  ;;  %v1989_v20 = vld [vmem:[#allocation10 + $0x90] sm:$0xff] }
  0x1b   :  { %340 = vmatpush.msra.mxu3 %v1945_v6  ;;  %1623 = vmatmul.msk.f32.vlgmr.msra.gmra.mxu2 %vm109_vm0, %v1979_v17  ;;  %v1987_v19 = vld [vmem:[#allocation10 + $0x100] sm:$0xff]  ;;  %v1993_v21 = vld [vmem:[#allocation10 + $0xe8] sm:$0xff]  ;;  %v1995_v22 = vld [vmem:[#allocation10 + $0x78] sm:$0xff] }
  0x1c   :  { %378 = vmatpush.msrb.mxu0 %v1958_v10  ;;  %v1997_v23 = vld [vmem:[#allocation4 + $0x10] sm:$0xff]  ;;  %v2001_v24 = vld [vmem:[#allocation10 + $0xd0] sm:$0xff]  ;;  %v2011_v29 = vld [vmem:[#allocation10 + $0x48] sm:$0xff] }
  0x1d   :  { %341 = vmatpush.msra.mxu3 %v1950_v7  ;;  %v99_v25 = vld [vmem:[#allocation7 + $0x20] sm:$0xff]  ;;  %v2003_v26 = vld [vmem:[#allocation10 + $0x60] sm:$0xff]  ;;  %v2009_v27 = vld [vmem:[#allocation10 + $0xb8] sm:$0xff] }
  0x1e   :  { %379 = vmatpush.msrb.mxu0 %v1961_v11  ;;  %1658 = vmatpush.msrb.mxu2 %v99_v25  ;;  %v96_v28 = vld [vmem:[#allocation7 + $0x8] sm:$0xff]  ;;  %v2015_v30 = vld [vmem:[#allocation10 + $0xa0] sm:$0xff]  ;;  %v2023_v32 = vld [vmem:[#allocation10 + $0x88] sm:$0xff] }
  0x1f   :  { %342 = vmatpush.msra.mxu3 %v1955_v9  ;;  %v2019_v31 = vld [vmem:[#allocation10 + $0x30] sm:$0xff]  ;;  %189 = vmatpush.msra.mxu1 %v99_v25  ;;  %v2025_v33 = vld [vmem:[#allocation10 + $0x18] sm:$0xff]  ;;  %v2027_v34 = vld [vmem:[#allocation4 + $0x18] sm:$0xff] }
  0x20   :  { %380 = vmatpush.msrb.mxu0 %v1969_v14  ;;  %1659 = vmatpush.msrb.mxu2 %v96_v28  ;;  %v2031_v35 = vld [vmem:[#allocation10 + $0x70] sm:$0xff]  ;;  %v2035_v37 = vld [vmem:[#allocation10] sm:$0xff]  ;;  %v2041_v38 = vld [vmem:[#allocation10 + $0x58] sm:$0xff] }
  0x21   :  { %343 = vmatpush.msra.mxu3 %v1963_v12  ;;  %1617 = vmatmul.msk.f32.gmra.mxu0 %vm109_vm0, %v1965_v13  ;;  %v100_v36 = vld [vmem:[#allocation7 + $0x28] sm:$0xff]  ;;  %v97_v39 = vld [vmem:[#allocation7 + $0x10] sm:$0xff]  ;;  %v2056_v44 = vld [vmem:[#allocation10 + $0x28] sm:$0xff] }
  0x22   :  { %381 = vmatpush.msrb.mxu0 %v1977_v16  ;;  %190 = vmatpush.msra.mxu1 %v96_v28  ;;  %v2043_v40 = vld [vmem:[#allocation10 + $0x170] sm:$0xff]  ;;  %v2047_v41 = vld [vmem:[#allocation10 + $0x40] sm:$0xff]  ;;  %v2052_v43 = vld [vmem:[#allocation10 + $0x158] sm:$0xff] }
  0x23   :  { %344 = vmatpush.msra.mxu3 %v1971_v15  ;;  %1631 = vmatmul.msk.f32.vlgmr.msrb.gmra.mxu2 %vm109_vm0, %v1979_v17  ;;  %v2059_v45 = vld [vmem:[#allocation10 + $0x140] sm:$0xff]  ;;  %v2061_v46 = vld [vmem:[#allocation4 + $0x20] sm:$0xff]  ;;  %v2083_v50 = vld [vmem:[#allocation10 + $0xf8] sm:$0xff] }
  0x24   :  { %382 = vmatpush.msrb.mxu0 %v1987_v19  ;;  %1624 = vmatmul.msk.f32.vlgmr.msra.gmra.mxu1 %vm109_vm0, %v1942_v5  ;;  %v2066_v47 = vld [vmem:[#allocation10 + $0x10] sm:$0xff]  ;;  %v2069_v48 = vld [vmem:[#allocation10 + $0x128] sm:$0xff]  ;;  %v2090_v51 = vld [vmem:[#allocation10 + $0xe0] sm:$0xff] }
  0x25   :  { %345 = vmatpush.msra.mxu3 %v1981_v18  ;;  %230 = vmatpush.msra.mxu2 %v100_v36  ;;  %v2076_v49 = vld [vmem:[#allocation10 + $0x110] sm:$0xff]  ;;  %v2098_v53 = vld [vmem:[#allocation10 + $0xc8] sm:$0xff]  ;;  %v2112_v55 = vld [vmem:[#allocation10 + $0x98] sm:$0xff] }
  0x26   :  { %383 = vmatpush.msrb.mxu0 %v1993_v21  ;;  %500 = vmatpush.msrb.mxu1 %v1935_v0  ;;  %v2092_v52 = vld [vmem:[#allocation4 + $0x28] sm:$0xff]  ;;  %v2119_v56 = vld [vmem:[#allocation10 + $0x80] sm:$0xff]  ;;  %v2127_v58 = vld [vmem:[#allocation10 + $0x68] sm:$0xff] }
  0x27   :  { %346 = vmatpush.msra.mxu3 %v1989_v20  ;;  %231 = vmatpush.msra.mxu2 %v97_v39  ;;  %v2105_v54 = vld [vmem:[#allocation10 + $0xb0] sm:$0xff]  ;;  %v2121_v57 = vld [vmem:[#allocation4 + $0x30] sm:$0xff]  ;;  %v2154_v62 = vld [vmem:[#allocation10 + $0x8] sm:$0xff] }
  0x28   :  { %384 = vmatpush.msrb.mxu0 %v2001_v24  ;;  %501 = vmatpush.msrb.mxu1 %v1937_v1  ;;  %v2134_v59 = vld [vmem:[#allocation10 + $0x50] sm:$0xff]  ;;  %v2141_v60 = vld [vmem:[#allocation10 + $0x38] sm:$0xff]  ;;  %v2148_v61 = vld [vmem:[#allocation10 + $0x20] sm:$0xff] }
  0x29   :  { %347 = vmatpush.msra.mxu3 %v1995_v22  ;;  %1618 = vmatmul.msk.f32.gmra.mxu0 %vm109_vm0, %v1997_v23 }
  0x2a   :  { %385 = vmatpush.msrb.mxu0 %v2009_v27  ;;  %520 = vmatpush.msrb.mxu2 %v2043_v40 }
  0x2b   :  { %348 = vmatpush.msra.mxu3 %v2003_v26  ;;  %1632 = vmatmul.msk.f32.vlgmr.msra.gmra.mxu2 %vm109_vm0, %v1942_v5 }
  0x2c   :  { %386 = vmatpush.msrb.mxu0 %v2015_v30  ;;  %521 = vmatpush.msrb.mxu2 %v2052_v43 }
  0x2d   :  { %349 = vmatpush.msra.mxu3 %v2011_v29  ;;  %502 = vmatpush.msrb.mxu1 %v1940_v4 }
  0x2e   :  { %387 = vmatpush.msrb.mxu0 %v2023_v32  ;;  %522 = vmatpush.msrb.mxu2 %v2059_v45 }
  0x2f   :  { %350 = vmatpush.msra.mxu3 %v2019_v31  ;;  %1625 = vmatmul.msk.f32.gmra.mxu1 %vm109_vm0, %v1965_v13 }
  0x30   :  { %388 = vmatpush.msrb.mxu0 %v2031_v35  ;;  %523 = vmatpush.msrb.mxu2 %v2069_v48 }
  0x31   :  { %351 = vmatpush.msra.mxu3 %v2025_v33  ;;  %1619 = vmatmul.msk.f32.gmra.mxu0 %vm109_vm0, %v2027_v34 }
  0x32   :  { %389 = vmatpush.msrb.mxu0 %v2041_v38  ;;  %503 = vmatpush.msrb.mxu1 %v1945_v6 }
  0x33   :  { %352 = vmatpush.msra.mxu3 %v2035_v37  ;;  %1633 = vmatmul.msk.f32.gmra.mxu2 %vm109_vm0, %v1965_v13 }
  0x34   :  { %353 = vmatmul.f32.vlgmr.msra.gmra.mxu3 %v1888_v42  ;;  %390 = vmatpush.msrb.mxu0 %v2047_v41 }
  0x35   :  { %357 = vmatpush.msrb.mxu3 %v2043_v40  ;;  %524 = vmatpush.msrb.mxu2 %v2076_v49 }
  0x36   :  { %391 = vmatpush.msrb.mxu0 %v2056_v44  ;;  %504 = vmatpush.msrb.mxu1 %v1950_v7 }
  0x37   :  { %358 = vmatpush.msrb.mxu3 %v2052_v43  ;;  %525 = vmatpush.msrb.mxu2 %v2083_v50 }
  0x38   :  { %392 = vmatpush.msrb.mxu0 %v2066_v47  ;;  %505 = vmatpush.msrb.mxu1 %v1955_v9 }
  0x39   :  { %359 = vmatpush.msrb.mxu3 %v2059_v45  ;;  %1620 = vmatmul.msk.f32.gmra.mxu0 %vm109_vm0, %v2061_v46 }
  0x3a   :  { %664 = vmatpush.msra.mxu0 %v1935_v0  ;;  %526 = vmatpush.msrb.mxu2 %v2090_v51  ;;  %v101_v0 = vld [vmem:[#allocation9] sm:$0x7] }
  0x3b   :  { %360 = vmatpush.msrb.mxu3 %v2069_v48  ;;  %1634 = vmatmul.msk.f32.gmra.mxu2 %vm109_vm0, %v1997_v23 }
  0x3c   :  { %506 = vmatpush.msrb.mxu1 %v1963_v12  ;;  %527 = vmatpush.msrb.mxu2 %v2098_v53 }
  0x3d   :  { %361 = vmatpush.msrb.mxu3 %v2076_v49  ;;  %1626 = vmatmul.msk.f32.gmra.mxu1 %vm109_vm0, %v1997_v23 }
  0x3e   :  { %507 = vmatpush.msrb.mxu1 %v1971_v15  ;;  %528 = vmatpush.msrb.mxu2 %v2105_v54 }
  0x3f   :  { %362 = vmatpush.msrb.mxu3 %v2083_v50  ;;  %665 = vmatpush.msra.mxu0 %v1937_v1  ;;  %v103_v1 = vperm.slane %v101_v0, 0 }
  0x40   :  { %508 = vmatpush.msrb.mxu1 %v1981_v18  ;;  %529 = vmatpush.msrb.mxu2 %v2112_v55 }
  0x41   :  { %363 = vmatpush.msrb.mxu3 %v2090_v51  ;;  %1621 = vmatmul.msk.f32.gmra.mxu0 %vm109_vm0, %v2092_v52 }
  0x42   :  { %509 = vmatpush.msrb.mxu1 %v1989_v20  ;;  %530 = vmatpush.msrb.mxu2 %v2119_v56 }
  0x43   :  { %364 = vmatpush.msrb.mxu3 %v2098_v53  ;;  %1635 = vmatmul.msk.f32.gmra.mxu2 %vm109_vm0, %v2027_v34 }
  0x44   :  { %510 = vmatpush.msrb.mxu1 %v1995_v22  ;;  %531 = vmatpush.msrb.mxu2 %v2127_v58 }
  0x45   :  { %365 = vmatpush.msrb.mxu3 %v2105_v54  ;;  %1627 = vmatmul.msk.f32.gmra.mxu1 %vm109_vm0, %v2027_v34  ;;  %v2272_v34 = vperm.slane %v101_v0, 1 }
  0x46   :  { %511 = vmatpush.msrb.mxu1 %v2003_v26  ;;  %532 = vmatpush.msrb.mxu2 %v2134_v59 }
  0x47   :  { %366 = vmatpush.msrb.mxu3 %v2112_v55  ;;  %666 = vmatpush.msra.mxu0 %v1940_v4 }
  0x48   :  { %512 = vmatpush.msrb.mxu1 %v2011_v29  ;;  %533 = vmatpush.msrb.mxu2 %v2141_v60 }
  0x49   :  { %367 = vmatpush.msrb.mxu3 %v2119_v56  ;;  %1622 = vmatmul.msk.f32.gmra.mxu0 %vm109_vm0, %v2121_v57 }
  0x4a   :  { %513 = vmatpush.msrb.mxu1 %v2019_v31  ;;  %534 = vmatpush.msrb.mxu2 %v2148_v61 }
  0x4b   :  { %368 = vmatpush.msrb.mxu3 %v2127_v58  ;;  %1636 = vmatmul.msk.f32.gmra.mxu2 %vm109_vm0, %v2061_v46 }
  0x4c   :  { %514 = vmatpush.msrb.mxu1 %v2025_v33  ;;  %535 = vmatpush.msrb.mxu2 %v2154_v62 }
  0x4d   :  { %369 = vmatpush.msrb.mxu3 %v2134_v59  ;;  %1628 = vmatmul.msk.f32.gmra.mxu1 %vm109_vm0, %v2061_v46 }
  0x4e   :  { %515 = vmatpush.msrb.mxu1 %v2035_v37  ;;  %704 = vmatpush.msra.mxu2 %v1953_v8 }
  0x4f   :  { %370 = vmatpush.msrb.mxu3 %v2141_v60  ;;  %667 = vmatpush.msra.mxu0 %v1945_v6 }
  0x50   :  { %684 = vmatpush.msra.mxu1 %v2043_v40  ;;  %705 = vmatpush.msra.mxu2 %v1958_v10 }
  0x51   :  { %371 = vmatpush.msrb.mxu3 %v2148_v61  ;;  %393 = vmatmul.f32.vlgmr.msrb.gmra.mxu0 %v1888_v42 }
  0x52   :  { %685 = vmatpush.msra.mxu1 %v2052_v43  ;;  %668 = vmatpush.msra.mxu0 %v1950_v7 }
  0x53   :  { %372 = vmatpush.msrb.mxu3 %v2154_v62  ;;  %1637 = vmatmul.msk.f32.gmra.mxu2 %vm109_vm0, %v2092_v52 }
  0x54   :  { %373 = vmatmul.f32.vlgmr.msrb.gmra.mxu3 %v1888_v42  ;;  %686 = vmatpush.msra.mxu1 %v2059_v45 }
  0x55   :  { %540 = vmatpush.msra.mxu3 %v1953_v8  ;;  %706 = vmatpush.msra.mxu2 %v1961_v11 }
  0x56   :  { %1629 = vmatmul.msk.f32.gmra.mxu1 %vm109_vm0, %v2092_v52  ;;  %669 = vmatpush.msra.mxu0 %v1955_v9 }
  0x57   :  { %541 = vmatpush.msra.mxu3 %v1958_v10  ;;  %687 = vmatpush.msra.mxu1 %v2069_v48 }
  0x58   :  { %707 = vmatpush.msra.mxu2 %v1969_v14  ;;  %670 = vmatpush.msra.mxu0 %v1963_v12 }
  0x59   :  { %542 = vmatpush.msra.mxu3 %v1961_v11  ;;  %688 = vmatpush.msra.mxu1 %v2076_v49 }
  0x5a   :  { %708 = vmatpush.msra.mxu2 %v1977_v16  ;;  %671 = vmatpush.msra.mxu0 %v1971_v15 }
  0x5b   :  { %543 = vmatpush.msra.mxu3 %v1969_v14  ;;  %689 = vmatpush.msra.mxu1 %v2083_v50 }
  0x5c   :  { %709 = vmatpush.msra.mxu2 %v1987_v19  ;;  %672 = vmatpush.msra.mxu0 %v1981_v18 }
  0x5d   :  { %544 = vmatpush.msra.mxu3 %v1977_v16  ;;  %1638 = vmatmul.msk.f32.gmra.mxu2 %vm109_vm0, %v2121_v57 }
  0x5e   :  { %690 = vmatpush.msra.mxu1 %v2090_v51  ;;  %710 = vmatpush.msra.mxu2 %v1993_v21 }
  0x5f   :  { %545 = vmatpush.msra.mxu3 %v1987_v19  ;;  %1630 = vmatmul.msk.f32.gmra.mxu1 %vm109_vm0, %v2121_v57 }
  0x60   :  { %691 = vmatpush.msra.mxu1 %v2098_v53  ;;  %711 = vmatpush.msra.mxu2 %v2001_v24 }
  0x61   :  { %546 = vmatpush.msra.mxu3 %v1993_v21  ;;  %673 = vmatpush.msra.mxu0 %v1989_v20 }
  0x62   :  { %692 = vmatpush.msra.mxu1 %v2105_v54  ;;  %712 = vmatpush.msra.mxu2 %v2009_v27 }
  0x63   :  { %547 = vmatpush.msra.mxu3 %v2001_v24  ;;  %674 = vmatpush.msra.mxu0 %v1995_v22 }
  0x64   :  { %693 = vmatpush.msra.mxu1 %v2112_v55  ;;  %713 = vmatpush.msra.mxu2 %v2015_v30 }
  0x65   :  { %548 = vmatpush.msra.mxu3 %v2009_v27  ;;  %1639 = vmatmul.msk.f32.gmra.mxu2 %vm109_vm0, %v1979_v17 }
  0x66   :  { %694 = vmatpush.msra.mxu1 %v2119_v56  ;;  %714 = vmatpush.msra.mxu2 %v2023_v32 }
  0x67   :  { %549 = vmatpush.msra.mxu3 %v2015_v30  ;;  %675 = vmatpush.msra.mxu0 %v2003_v26 }
  0x68   :  { %695 = vmatpush.msra.mxu1 %v2127_v58  ;;  %715 = vmatpush.msra.mxu2 %v2031_v35 }
  0x69   :  { %550 = vmatpush.msra.mxu3 %v2023_v32  ;;  %676 = vmatpush.msra.mxu0 %v2011_v29 }
  0x6a   :  { %696 = vmatpush.msra.mxu1 %v2134_v59  ;;  %716 = vmatpush.msra.mxu2 %v2041_v38 }
  0x6b   :  { %551 = vmatpush.msra.mxu3 %v2031_v35  ;;  %677 = vmatpush.msra.mxu0 %v2019_v31 }
  0x6c   :  { %697 = vmatpush.msra.mxu1 %v2141_v60  ;;  %717 = vmatpush.msra.mxu2 %v2047_v41 }
  0x6d   :  { %552 = vmatpush.msra.mxu3 %v2041_v38  ;;  %678 = vmatpush.msra.mxu0 %v2025_v33 }
  0x6e   :  { %698 = vmatpush.msra.mxu1 %v2148_v61  ;;  %718 = vmatpush.msra.mxu2 %v2056_v44 }
  0x6f   :  { %553 = vmatpush.msra.mxu3 %v2047_v41  ;;  %679 = vmatpush.msra.mxu0 %v2035_v37 }
  0x70   :  { %699 = vmatpush.msra.mxu1 %v2154_v62  ;;  %719 = vmatpush.msra.mxu2 %v2066_v47 }
  0x71   :  { %554 = vmatpush.msra.mxu3 %v2056_v44  ;;  %848 = vmatpush.msrb.mxu0 %v2043_v40 }
  0x73   :  { %555 = vmatpush.msra.mxu3 %v2066_v47  ;;  %849 = vmatpush.msrb.mxu0 %v2052_v43 }
  0x75   :  { %850 = vmatpush.msrb.mxu0 %v2059_v45 }
  0x77   :  { %851 = vmatpush.msrb.mxu0 %v2069_v48 }
  0x79   :  { %852 = vmatpush.msrb.mxu0 %v2076_v49 }
  0x7b   :  { %853 = vmatpush.msrb.mxu0 %v2083_v50 }
  0x7d   :  { %854 = vmatpush.msrb.mxu0 %v2090_v51  ;;  %v2280_v51 = vld [vmem:[%s2716_s4] ss:$0 sm:$0xff] }
  0x7f   :  { %855 = vmatpush.msrb.mxu0 %v2098_v53 }
  0x81   :  { %856 = vmatpush.msrb.mxu0 %v2105_v54 }
  0x83   :  { %857 = vmatpush.msrb.mxu0 %v2112_v55 }
  0x85   :  { %858 = vmatpush.msrb.mxu0 %v2119_v56 }
  0x87   :  { %859 = vmatpush.msrb.mxu0 %v2127_v58 }
  0x89   :  { %860 = vmatpush.msrb.mxu0 %v2134_v59  ;;  %v2283_v59 = vperm.slane %v101_v0, 2 }
  0x8b   :  { %861 = vmatpush.msrb.mxu0 %v2141_v60 }
  0x8d   :  { %862 = vmatpush.msrb.mxu0 %v2148_v61 }
  0x8f   :  { %863 = vmatpush.msrb.mxu0 %v2154_v62 }
  0x96   :  { %v151_v63 = vpop.f32.mrf.mxu0 }
  0x97   :  { %v152_v13 = vadd.f32 %v151_v63, %v103_v1 }
  0x9e   :  { %v154_v2 = vpop.f32.mrf.mxu0  ;;  %v172_v4 = vpop.f32.mrf.mxu2 }
  0x9f   :  { %v2258_v3 = vadd.f32 %v154_v2, %v103_v1  ;;  %v2260_v6 = vadd.f32 %v172_v4, %v103_v1 }
  0xa1   :  { %2718 = vst [vmem:[#allocation17_spill] sm:$0xff] %v2260_v6  ;;  %v192_v36 = vpop.f32.mrf.mxu1  ;;  %v2554_v6 = vld [vmem:[#allocation10 + $0x8] sm:$0xff] }
  0xa2   :  { %v193_v39 = vadd.f32 %v192_v36, %v2272_v34 }
  0xa6   :  { %v157_v5 = vpop.f32.mrf.mxu0  ;;  %v2275_v48 = vpop.f32.mrf.mxu2 }
  0xa7   :  { %v2262_v7 = vadd.f32 %v157_v5, %v103_v1  ;;  %2722 = vst [vmem:[#allocation21_spill] sm:$0xff] %v2275_v48  ;;  %v2556_v48 = vld [vmem:[#allocation10 + $0x10] sm:$0xff] }
  0xae   :  { %v160_v9 = vpop.f32.mrf.mxu0  ;;  %v233_v61 = vpop.f32.mrf.mxu2 }
  0xaf   :  { %v2264_v12 = vadd.f32 %v160_v9, %v103_v1  ;;  %v234_v63 = vadd.f32 %v233_v61, %v2283_v59 }
  0xb6   :  { %v163_v15 = vpop.f32.mrf.mxu0 }
  0xb7   :  { %v354_v17 = vpop.f32.mrf.mxu3  ;;  %v2266_v18 = vadd.f32 %v163_v15, %v103_v1 }
  0xb8   :  { %v397_v20 = vadd.f32 %v354_v17, %v152_v13 }
  0xb9   :  { %2719 = vst [vmem:[#allocation18_spill] sm:$0xff] %v2266_v18 }
  0xba   :  { %v1640_v22 = vmul.f32 -1.442695, %v397_v20 }
  0xbc   :  { %1671 = vpow2.f32 %v1640_v22 }
  0xbe   :  { %v166_v23 = vpop.f32.mrf.mxu0 }
  0xbf   :  { %v2268_v25 = vadd.f32 %v166_v23, %v103_v1 }
  0xc1   :  { %2720 = vst [vmem:[#allocation19_spill] sm:$0xff] %v2268_v25 }
  0xc2   :  { %v1672_v26 = vpop.eup %1671 }
  0xc3   :  { %v401_v28 = vadd.f32 1.0, %v1672_v26 }
  0xc5   :  { %1673 = vrcp.f32 %v401_v28  ;;  %v413_v50 = vand.u32 2147483648, %v401_v28  ;;  %vm407_vm2 = vweird.f32 %v401_v28  ;;  %v411_v52 = vand.u32 2147483647, %v401_v28 }
  0xc6   :  { %v169_v29 = vpop.f32.mrf.mxu0 }
  0xc7   :  { %v2270_v31 = vadd.f32 %v169_v29, %v103_v1  ;;  %v414_v57 = vor.u32 1.1754944e-38, %v413_v50  ;;  %vm412_vm4 = vcmp.eq.f32.partialorder %v411_v52, 8.507059e+37 }
  0xc9   :  { %2721 = vst [vmem:[#allocation20_spill] sm:$0xff] %v2270_v31 }
  0xcb   :  { %v1674_v33 = vpop.eup %1673 }
  0xcc   :  { %v403_v37 = vmul.f32 %v1674_v33, %v401_v28  ;;  %vm408_vm1 = vweird.f32 %v1674_v33 }
  0xcd   :  { %vm409_vm3 = vmor %vm407_vm2, %vm408_vm1 }
  0xce   :  { %v404_v40 = vsub.f32 1.0, %v403_v37  ;;  %v394_v54 = vpop.f32.mrf.mxu0 }
  0xcf   :  { %v437_v58 = vadd.f32 %v2280_v51, %v394_v54 }
  0xd0   :  { %v405_v46 = vmul.f32 %v1674_v33, %v404_v40 }
  0xd2   :  { %v406_v49 = vadd.f32 %v1674_v33, %v405_v46 }
  0xd4   :  { %v410_v55 = vsel %vm409_vm3, %v1674_v33, %v406_v49 }
  0xd5   :  { %v415_v60 = vsel %vm412_vm4, %v414_v57, %v410_v55 }
  0xd6   :  { %v438_v62 = vmul.f32 %v437_v58, %v415_v60 }
  0xd7   :  { %v374_v42 = vpop.f32.mrf.mxu3 }
  0xd8   :  { %v417_v43 = vadd.f32 %v374_v42, %v193_v39  ;;  %v439_v4 = vadd.f32 %v438_v62, %v234_v63 }
  0xda   :  { %v1641_v45 = vmul.f32 -1.442695, %v417_v43 }
  0xdc   :  { %1675 = vpow2.f32 %v1641_v45 }
  0xe2   :  { %v1676_v53 = vpop.eup %1675 }
  0xe3   :  { %v421_v56 = vadd.f32 1.0, %v1676_v53 }
  0xe5   :  { %1677 = vrcp.f32 %v421_v56  ;;  %v433_v9 = vand.u32 2147483648, %v421_v56  ;;  %v431_v15 = vand.u32 2147483647, %v421_v56  ;;  %vm427_vm6 = vweird.f32 %v421_v56 }
  0xe6   :  { %1679 = vtanh.f32 %v439_v4 }
  0xe7   :  { %v434_v0 = vor.u32 1.1754944e-38, %v433_v9  ;;  %vm432_vm8 = vcmp.eq.f32.partialorder %v431_v15, 8.507059e+37 }
  0xeb   :  { %v1678_v1 = vpop.eup %1677 }
  0xec   :  { %v423_v2 = vmul.f32 %v1678_v1, %v421_v56  ;;  %vm428_vm5 = vweird.f32 %v1678_v1  ;;  %v1680_v26 = vpop.eup %1679 }
  0xed   :  { %vm429_vm7 = vmor %vm427_vm6, %vm428_vm5 }
  0xee   :  { %v424_v5 = vsub.f32 1.0, %v423_v2 }
  0xf0   :  { %v425_v13 = vmul.f32 %v1678_v1, %v424_v5 }
  0xf2   :  { %v426_v17 = vadd.f32 %v1678_v1, %v425_v13 }
  0xf4   :  { %v430_v20 = vsel %vm429_vm7, %v1678_v1, %v426_v17 }
  0xf5   :  { %v435_v22 = vsel %vm432_vm8, %v434_v0, %v430_v20 }
  0xf6   :  { %v441_v23 = vsub.f32 1.0, %v435_v22  ;;  %v443_v29 = vmul.f32 0.0, %v435_v22 }
  0xf8   :  { %v442_v28 = vmul.f32 %v1680_v26, %v441_v23 }
  0xfa   :  { %v2286_v33 = vadd.f32 %v443_v29, %v442_v28 }
  0xfc   :  { %446 = vst [vmem:[#allocation12] sm:$0xff] %v2286_v33  ;;  %516 = vmatmul.f32.vlgmr.msrb.gmra.mxu1 %v2286_v33  ;;  %536 = vmatmul.f32.vlgmr.msrb.gmra.mxu2 %v2286_v33 }
  0xfd   :  { %556 = vmatmul.f32.vlgmr.msra.gmra.mxu3 %v2286_v33  ;;  %868 = vmatpush.msrb.mxu1 %v1953_v8  ;;  %v236_v8 = vpop.f32.mrf.mxu2 }
  0xfe   :  { %v237_v1 = vadd.f32 %v236_v8, %v2283_v59 }
  0xff   :  { %869 = vmatpush.msrb.mxu1 %v1958_v10  ;;  %v195_v10 = vpop.f32.mrf.mxu1 }
 0x100   :  { %v196_v36 = vadd.f32 %v195_v10, %v2272_v34  ;;  %v2341_v10 = vld [vmem:[#allocation10 + $0x168] sm:$0xff] }
 0x101   :  { %870 = vmatpush.msrb.mxu1 %v1961_v11  ;;  %828 = vmatpush.msrb.mxu3 %v2341_v10 }
 0x102   :  { %992 = vmatpush.msrb.mxu2 %v2341_v10 }
 0x103   :  { %871 = vmatpush.msrb.mxu1 %v1969_v14 }
 0x105   :  { %872 = vmatpush.msrb.mxu1 %v1977_v16  ;;  %v2308_v11 = vpop.f32.mrf.mxu2 }
 0x107   :  { %873 = vmatpush.msrb.mxu1 %v1987_v19  ;;  %v2310_v14 = vpop.f32.mrf.mxu1 }
 0x109   :  { %874 = vmatpush.msrb.mxu1 %v1993_v21 }
 0x10b   :  { %875 = vmatpush.msrb.mxu1 %v2001_v24 }
 0x10d   :  { %876 = vmatpush.msrb.mxu1 %v2009_v27  ;;  %v2312_v16 = vpop.f32.mrf.mxu2 }
 0x10f   :  { %877 = vmatpush.msrb.mxu1 %v2015_v30  ;;  %v2314_v19 = vpop.f32.mrf.mxu1 }
 0x111   :  { %878 = vmatpush.msrb.mxu1 %v2023_v32 }
 0x113   :  { %879 = vmatpush.msrb.mxu1 %v2031_v35 }
 0x115   :  { %880 = vmatpush.msrb.mxu1 %v2041_v38  ;;  %v2316_v21 = vpop.f32.mrf.mxu2 }
 0x116   :  { %2723 = vst [vmem:[#allocation22_spill] sm:$0xff] %v2316_v21 }
 0x117   :  { %881 = vmatpush.msrb.mxu1 %v2047_v41  ;;  %v2318_v24 = vpop.f32.mrf.mxu1 }
 0x118   :  { %2724 = vst [vmem:[#allocation23_spill] sm:$0xff] %v2318_v24 }
 0x119   :  { %882 = vmatpush.msrb.mxu1 %v2056_v44 }
 0x11b   :  { %883 = vmatpush.msrb.mxu1 %v2066_v47 }
 0x11d   :  { %v2320_v27 = vpop.f32.mrf.mxu2 }
 0x11e   :  { %2725 = vst [vmem:[#allocation24_spill] sm:$0xff] %v2320_v27 }
 0x11f   :  { %v2322_v30 = vpop.f32.mrf.mxu1 }
 0x120   :  { %2726 = vst [vmem:[#allocation25_spill] sm:$0xff] %v2322_v30 }
 0x125   :  { %v2324_v32 = vpop.f32.mrf.mxu2 }
 0x126   :  { %2727 = vst [vmem:[#allocation26_spill] sm:$0xff] %v2324_v32 }
 0x127   :  { %v2326_v35 = vpop.f32.mrf.mxu1 }
 0x128   :  { %2728 = vst [vmem:[#allocation27_spill] sm:$0xff] %v2326_v35 }
 0x12d   :  { %v2328_v38 = vpop.f32.mrf.mxu2 }
 0x12e   :  { %2729 = vst [vmem:[#allocation28_spill] sm:$0xff] %v2328_v38 }
 0x179   :  { %v517_v41 = vpop.f32.mrf.mxu1 }
 0x17a   :  { %v560_v44 = vadd.f32 %v517_v41, %v2258_v3  ;;  %v2345_v41 = vld [vmem:[#allocation10 + $0x150] sm:$0xff] }
 0x17b   :  { %829 = vmatpush.msrb.mxu3 %v2345_v41  ;;  %993 = vmatpush.msrb.mxu2 %v2345_v41 }
 0x17c   :  { %v1642_v47 = vmul.f32 -1.442695, %v560_v44  ;;  %v2355_v44 = vld [vmem:[#allocation10 + $0x120] sm:$0xff] }
 0x17e   :  { %1681 = vpow2.f32 %v1642_v47  ;;  %v2360_v47 = vld [vmem:[#allocation10 + $0x108] sm:$0xff] }
 0x17f   :  { %v537_v37 = vpop.f32.mrf.mxu2 }
 0x180   :  { %v580_v39 = vadd.f32 %v537_v37, %v196_v36  ;;  %v557_v56 = vpop.f32.mrf.mxu3  ;;  %v2365_v36 = vld [vmem:[#allocation10 + $0xf0] sm:$0xff]  ;;  %v2370_v37 = vld [vmem:[#allocation10 + $0xd8] sm:$0xff] }
 0x181   :  { %v600_v63 = vadd.f32 %v2280_v51, %v557_v56 }
 0x182   :  { %v1643_v40 = vmul.f32 -1.442695, %v580_v39  ;;  %v2375_v39 = vld [vmem:[#allocation10 + $0xc0] sm:$0xff] }
 0x184   :  { %v1682_v42 = vpop.eup %1681  ;;  %1683 = vpow2.f32 %v1643_v40  ;;  %v199_v40 = vadd.f32 %v2310_v14, %v2272_v34 }
 0x185   :  { %v564_v43 = vadd.f32 1.0, %v1682_v42  ;;  %v2382_v42 = vld [vmem:[#allocation10 + $0xa8] sm:$0xff] }
 0x187   :  { %1685 = vrcp.f32 %v564_v43  ;;  %v576_v53 = vand.u32 2147483648, %v564_v43  ;;  %v574_v3 = vand.u32 2147483647, %v564_v43  ;;  %vm570_vm10 = vweird.f32 %v564_v43 }
 0x189   :  { %v577_v60 = vor.u32 1.1754944e-38, %v576_v53  ;;  %vm575_vm12 = vcmp.eq.f32.partialorder %v574_v3, 8.507059e+37  ;;  %v2393_v53 = vld [vmem:[#allocation10 + $0x78] sm:$0xff]  ;;  %v2408_v3 = vld [vmem:[#allocation10 + $0x30] sm:$0xff] }
 0x18a   :  { %v1684_v45 = vpop.eup %1683 }
 0x18b   :  { %v584_v46 = vadd.f32 1.0, %v1684_v45 }
 0x18d   :  { %v1686_v49 = vpop.eup %1685  ;;  %1687 = vrcp.f32 %v584_v46  ;;  %v596_v5 = vand.u32 2147483648, %v584_v46  ;;  %v594_v13 = vand.u32 2147483647, %v584_v46  ;;  %vm590_vm14 = vweird.f32 %v584_v46 }
 0x18e   :  { %v566_v50 = vmul.f32 %v1686_v49, %v564_v43  ;;  %vm571_vm9 = vweird.f32 %v1686_v49 }
 0x18f   :  { %vm572_vm11 = vmor %vm570_vm10, %vm571_vm9  ;;  %v597_v0 = vor.u32 1.1754944e-38, %v596_v5  ;;  %vm595_vm0 = vcmp.eq.f32.partialorder %v594_v13, 8.507059e+37 }
 0x190   :  { %v567_v52 = vsub.f32 1.0, %v566_v50  ;;  %v2388_v50 = vld [vmem:[#allocation10 + $0x90] sm:$0xff] }
 0x192   :  { %v568_v54 = vmul.f32 %v1686_v49, %v567_v52 }
 0x193   :  { %v1688_v55 = vpop.eup %1687 }
 0x194   :  { %v586_v57 = vmul.f32 %v1688_v55, %v584_v46  ;;  %v569_v58 = vadd.f32 %v1686_v49, %v568_v54  ;;  %vm591_vm13 = vweird.f32 %v1688_v55  ;;  %v2403_v54 = vld [vmem:[#allocation10 + $0x48] sm:$0xff] }
 0x195   :  { %vm592_vm15 = vmor %vm590_vm14, %vm591_vm13 }
 0x196   :  { %v587_v61 = vsub.f32 1.0, %v586_v57  ;;  %v573_v62 = vsel %vm572_vm11, %v1686_v49, %v569_v58  ;;  %v2415_v57 = vld [vmem:[#allocation10] sm:$0xff] }
 0x197   :  { %v578_v2 = vsel %vm575_vm12, %v577_v60, %v573_v62 }
 0x198   :  { %v588_v4 = vmul.f32 %v1688_v55, %v587_v61  ;;  %v601_v9 = vmul.f32 %v600_v63, %v578_v2 }
 0x19a   :  { %v589_v15 = vadd.f32 %v1688_v55, %v588_v4  ;;  %v602_v17 = vadd.f32 %v601_v9, %v237_v1 }
 0x19c   :  { %v593_v20 = vsel %vm592_vm15, %v1688_v55, %v589_v15  ;;  %1689 = vtanh.f32 %v602_v17  ;;  %v2412_v55 = vld [vmem:[#allocation10 + $0x18] sm:$0xff] }
 0x19d   :  { %v598_v22 = vsel %vm595_vm0, %v597_v0, %v593_v20 }
 0x19e   :  { %v604_v23 = vsub.f32 1.0, %v598_v22  ;;  %v606_v29 = vmul.f32 %v598_v22, %v2286_v33  ;;  %v2350_v33 = vld [vmem:[#allocation10 + $0x138] sm:$0xff] }
 0x19f   :  { %830 = vmatpush.msrb.mxu3 %v2350_v33  ;;  %994 = vmatpush.msrb.mxu2 %v2350_v33 }
 0x1a1   :  { %831 = vmatpush.msrb.mxu3 %v2355_v44  ;;  %995 = vmatpush.msrb.mxu2 %v2355_v44 }
 0x1a2   :  { %v1690_v26 = vpop.eup %1689 }
 0x1a3   :  { %v605_v28 = vmul.f32 %v1690_v26, %v604_v23  ;;  %832 = vmatpush.msrb.mxu3 %v2360_v47  ;;  %996 = vmatpush.msrb.mxu2 %v2360_v47 }
 0x1a5   :  { %v2335_v8 = vadd.f32 %v606_v29, %v605_v28  ;;  %833 = vmatpush.msrb.mxu3 %v2365_v36  ;;  %997 = vmatpush.msrb.mxu2 %v2365_v36 }
 0x1a7   :  { %610 = vst [vmem:[#allocation12 + $0x8] sm:$0xff] %v2335_v8  ;;  %680 = vmatmul.f32.vlgmr.msra.gmra.mxu0 %v2335_v8  ;;  %700 = vmatmul.f32.vlgmr.msra.gmra.mxu1 %v2335_v8 }
 0x1a8   :  { %720 = vmatmul.f32.vlgmr.msra.gmra.mxu2 %v2335_v8  ;;  %1156 = vmatpush.msra.mxu1 %v2341_v10 }
 0x1a9   :  { %834 = vmatpush.msrb.mxu3 %v2370_v37  ;;  %998 = vmatpush.msrb.mxu2 %v2370_v37 }
 0x1aa   :  { %1157 = vmatpush.msra.mxu1 %v2345_v41 }
 0x1ab   :  { %835 = vmatpush.msrb.mxu3 %v2375_v39  ;;  %999 = vmatpush.msrb.mxu2 %v2375_v39 }
 0x1ac   :  { %1158 = vmatpush.msra.mxu1 %v2350_v33 }
 0x1ad   :  { %836 = vmatpush.msrb.mxu3 %v2382_v42  ;;  %1000 = vmatpush.msrb.mxu2 %v2382_v42 }
 0x1ae   :  { %1159 = vmatpush.msra.mxu1 %v2355_v44 }
 0x1af   :  { %837 = vmatpush.msrb.mxu3 %v2388_v50  ;;  %1001 = vmatpush.msrb.mxu2 %v2388_v50 }
 0x1b0   :  { %1160 = vmatpush.msra.mxu1 %v2360_v47 }
 0x1b1   :  { %838 = vmatpush.msrb.mxu3 %v2393_v53  ;;  %1002 = vmatpush.msrb.mxu2 %v2393_v53 }
 0x1b2   :  { %1161 = vmatpush.msra.mxu1 %v2365_v36 }
 0x1b4   :  { %1162 = vmatpush.msra.mxu1 %v2370_v37 }
 0x1b6   :  { %1163 = vmatpush.msra.mxu1 %v2375_v39 }
 0x1b8   :  { %1164 = vmatpush.msra.mxu1 %v2382_v42 }
 0x1ba   :  { %1165 = vmatpush.msra.mxu1 %v2388_v50 }
 0x1bc   :  { %1166 = vmatpush.msra.mxu1 %v2393_v53 }
 0x224   :  { %v681_v43 = vpop.f32.mrf.mxu0  ;;  %v701_v45 = vpop.f32.mrf.mxu1 }
 0x225   :  { %v724_v46 = vadd.f32 %v681_v43, %v2262_v7  ;;  %v744_v49 = vadd.f32 %v701_v45, %v199_v40  ;;  %v2398_v7 = vld [vmem:[#allocation10 + $0x60] sm:$0xff]  ;;  %v240_v40 = vadd.f32 %v2308_v11, %v2283_v59  ;;  %v2434_v11 = vld [vmem:[#allocation10 + $0x170] sm:$0xff] }
 0x226   :  { %839 = vmatpush.msrb.mxu3 %v2398_v7  ;;  %1003 = vmatpush.msrb.mxu2 %v2398_v7 }
 0x227   :  { %v1644_v14 = vmul.f32 -1.442695, %v724_v46  ;;  %v1645_v52 = vmul.f32 -1.442695, %v744_v49  ;;  %1167 = vmatpush.msra.mxu1 %v2398_v7 }
 0x228   :  { %840 = vmatpush.msrb.mxu3 %v2403_v54  ;;  %1004 = vmatpush.msrb.mxu2 %v2403_v54 }
 0x229   :  { %1691 = vpow2.f32 %v1644_v14  ;;  %1168 = vmatpush.msra.mxu1 %v2403_v54 }
 0x22a   :  { %1693 = vpow2.f32 %v1645_v52  ;;  %841 = vmatpush.msrb.mxu3 %v2408_v3  ;;  %1005 = vmatpush.msrb.mxu2 %v2408_v3 }
 0x22b   :  { %1169 = vmatpush.msra.mxu1 %v2408_v3  ;;  %v721_v0 = vpop.f32.mrf.mxu2 }
 0x22c   :  { %842 = vmatpush.msrb.mxu3 %v2412_v55  ;;  %1006 = vmatpush.msrb.mxu2 %v2412_v55  ;;  %v764_v26 = vadd.f32 %v2280_v51, %v721_v0  ;;  %v202_v0 = vadd.f32 %v2314_v19, %v2272_v34 }
 0x22d   :  { %1170 = vmatpush.msra.mxu1 %v2412_v55 }
 0x22e   :  { %843 = vmatpush.msrb.mxu3 %v2415_v57  ;;  %1007 = vmatpush.msrb.mxu2 %v2415_v57 }
 0x22f   :  { %v1692_v56 = vpop.eup %1691  ;;  %1171 = vmatpush.msra.mxu1 %v2415_v57 }
 0x230   :  { %v1694_v58 = vpop.eup %1693  ;;  %v728_v60 = vadd.f32 1.0, %v1692_v56  ;;  %1012 = vmatpush.msra.mxu3 %v2434_v11  ;;  %1176 = vmatpush.msra.mxu2 %v2434_v11 }
 0x231   :  { %v748_v61 = vadd.f32 1.0, %v1694_v58 }
 0x232   :  { %1695 = vrcp.f32 %v728_v60  ;;  %v740_v9 = vand.u32 2147483648, %v728_v60  ;;  %v738_v15 = vand.u32 2147483647, %v728_v60  ;;  %vm734_vm2 = vweird.f32 %v728_v60 }
 0x233   :  { %1697 = vrcp.f32 %v748_v61  ;;  %v760_v43 = vand.u32 2147483648, %v748_v61  ;;  %vm754_vm6 = vweird.f32 %v748_v61  ;;  %v758_v46 = vand.u32 2147483647, %v748_v61 }
 0x234   :  { %v741_v22 = vor.u32 1.1754944e-38, %v740_v9  ;;  %vm739_vm4 = vcmp.eq.f32.partialorder %v738_v15, 8.507059e+37  ;;  %v2456_v9 = vld [vmem:[#allocation10 + $0x128] sm:$0xff]  ;;  %v2464_v15 = vld [vmem:[#allocation10 + $0x110] sm:$0xff] }
 0x235   :  { %v761_v52 = vor.u32 1.1754944e-38, %v760_v43  ;;  %vm759_vm8 = vcmp.eq.f32.partialorder %v758_v46, 8.507059e+37  ;;  %v2492_v43 = vld [vmem:[#allocation10 + $0xd0] sm:$0xff]  ;;  %v2500_v46 = vld [vmem:[#allocation10 + $0xb8] sm:$0xff] }
 0x238   :  { %v1696_v62 = vpop.eup %1695 }
 0x239   :  { %v1698_v63 = vpop.eup %1697  ;;  %v730_v1 = vmul.f32 %v1696_v62, %v728_v60  ;;  %vm735_vm1 = vweird.f32 %v1696_v62 }
 0x23a   :  { %v750_v2 = vmul.f32 %v1698_v63, %v748_v61  ;;  %vm736_vm3 = vmor %vm734_vm2, %vm735_vm1  ;;  %vm755_vm5 = vweird.f32 %v1698_v63  ;;  %v2436_v61 = vld [vmem:[#allocation10 + $0x178] sm:$0xff] }
 0x23b   :  { %v731_v4 = vsub.f32 1.0, %v730_v1  ;;  %vm756_vm7 = vmor %vm754_vm6, %vm755_vm5  ;;  %1032 = vmatpush.msra.mxu0 %v2436_v61 }
 0x23c   :  { %v751_v5 = vsub.f32 1.0, %v750_v2 }
 0x23d   :  { %v732_v13 = vmul.f32 %v1696_v62, %v731_v4  ;;  %v2448_v4 = vld [vmem:[#allocation10 + $0x140] sm:$0xff] }
 0x23e   :  { %v752_v17 = vmul.f32 %v1698_v63, %v751_v5  ;;  %v2450_v5 = vld [vmem:[#allocation10 + $0x148] sm:$0xff] }
 0x23f   :  { %v733_v20 = vadd.f32 %v1696_v62, %v732_v13  ;;  %v2458_v13 = vld [vmem:[#allocation10 + $0x130] sm:$0xff] }
 0x240   :  { %v753_v28 = vadd.f32 %v1698_v63, %v752_v17  ;;  %v2466_v17 = vld [vmem:[#allocation10 + $0x118] sm:$0xff] }
 0x241   :  { %v737_v23 = vsel %vm736_vm3, %v1696_v62, %v733_v20  ;;  %v2474_v20 = vld [vmem:[#allocation10 + $0xf8] sm:$0xff] }
 0x242   :  { %v742_v29 = vsel %vm739_vm4, %v741_v22, %v737_v23  ;;  %v757_v14 = vsel %vm756_vm7, %v1698_v63, %v753_v28  ;;  %v2440_v63 = vld [vmem:[#allocation10 + $0x158] sm:$0xff]  ;;  %v2476_v22 = vld [vmem:[#allocation10 + $0x100] sm:$0xff] }
 0x243   :  { %v765_v45 = vmul.f32 %v764_v26, %v742_v29  ;;  %v762_v56 = vsel %vm759_vm8, %v761_v52, %v757_v14  ;;  %1013 = vmatpush.msra.mxu3 %v2440_v63  ;;  %1177 = vmatpush.msra.mxu2 %v2440_v63  ;;  %v2482_v28 = vld [vmem:[#allocation10 + $0xe0] sm:$0xff]  ;;  %v2484_v29 = vld [vmem:[#allocation10 + $0xe8] sm:$0xff] }
 0x244   :  { %v768_v58 = vsub.f32 1.0, %v762_v56  ;;  %v770_v1 = vmul.f32 %v762_v56, %v2335_v8  ;;  %v2442_v8 = vld [vmem:[#allocation10 + $0x160] sm:$0xff] }
 0x245   :  { %v766_v49 = vadd.f32 %v765_v45, %v240_v40  ;;  %1033 = vmatpush.msra.mxu0 %v2442_v8  ;;  %1014 = vmatpush.msra.mxu3 %v2448_v4  ;;  %v2490_v40 = vld [vmem:[#allocation10 + $0xc8] sm:$0xff]  ;;  %v2498_v45 = vld [vmem:[#allocation10 + $0xb0] sm:$0xff]  ;;  %v2508_v52 = vld [vmem:[#allocation10 + $0xa0] sm:$0xff] }
 0x246   :  { %1178 = vmatpush.msra.mxu2 %v2448_v4 }
 0x247   :  { %1699 = vtanh.f32 %v766_v49  ;;  %1034 = vmatpush.msra.mxu0 %v2450_v5  ;;  %1015 = vmatpush.msra.mxu3 %v2456_v9  ;;  %v2502_v49 = vld [vmem:[#allocation10 + $0x98] sm:$0xff] }
 0x248   :  { %1179 = vmatpush.msra.mxu2 %v2456_v9 }
 0x249   :  { %1035 = vmatpush.msra.mxu0 %v2458_v13  ;;  %1016 = vmatpush.msra.mxu3 %v2464_v15 }
 0x24a   :  { %1180 = vmatpush.msra.mxu2 %v2464_v15 }
 0x24b   :  { %1036 = vmatpush.msra.mxu0 %v2466_v17  ;;  %1017 = vmatpush.msra.mxu3 %v2474_v20 }
 0x24c   :  { %1181 = vmatpush.msra.mxu2 %v2474_v20 }
 0x24d   :  { %v1700_v60 = vpop.eup %1699  ;;  %1037 = vmatpush.msra.mxu0 %v2476_v22  ;;  %1018 = vmatpush.msra.mxu3 %v2482_v28 }
 0x24e   :  { %v769_v62 = vmul.f32 %v1700_v60, %v768_v58  ;;  %1182 = vmatpush.msra.mxu2 %v2482_v28  ;;  %v2511_v58 = vld [vmem:[#allocation10 + $0x80] sm:$0xff]  ;;  %v2513_v60 = vld [vmem:[#allocation10 + $0x88] sm:$0xff] }
 0x24f   :  { %1038 = vmatpush.msra.mxu0 %v2484_v29  ;;  %1019 = vmatpush.msra.mxu3 %v2490_v40 }
 0x250   :  { %v2428_v2 = vadd.f32 %v770_v1, %v769_v62  ;;  %1183 = vmatpush.msra.mxu2 %v2490_v40  ;;  %v2519_v1 = vld [vmem:[#allocation10 + $0x68] sm:$0xff] }
 0x251   :  { %1039 = vmatpush.msra.mxu0 %v2492_v43  ;;  %1020 = vmatpush.msra.mxu3 %v2498_v45 }
 0x252   :  { %774 = vst [vmem:[#allocation12 + $0x10] sm:$0xff] %v2428_v2  ;;  %844 = vmatmul.f32.vlgmr.msrb.gmra.mxu3 %v2428_v2  ;;  %864 = vmatmul.f32.vlgmr.msrb.gmra.mxu0 %v2428_v2 }
 0x253   :  { %884 = vmatmul.f32.vlgmr.msrb.gmra.mxu1 %v2428_v2  ;;  %1040 = vmatpush.msra.mxu0 %v2500_v46 }
 0x254   :  { %1340 = vmatpush.msrb.mxu1 %v2434_v11  ;;  %1184 = vmatpush.msra.mxu2 %v2498_v45 }
 0x255   :  { %1021 = vmatpush.msra.mxu3 %v2502_v49  ;;  %1041 = vmatpush.msra.mxu0 %v2508_v52 }
 0x256   :  { %1341 = vmatpush.msrb.mxu1 %v2440_v63  ;;  %1185 = vmatpush.msra.mxu2 %v2502_v49 }
 0x257   :  { %1022 = vmatpush.msra.mxu3 %v2511_v58  ;;  %1042 = vmatpush.msra.mxu0 %v2513_v60 }
 0x258   :  { %1342 = vmatpush.msrb.mxu1 %v2448_v4  ;;  %1186 = vmatpush.msra.mxu2 %v2511_v58 }
 0x259   :  { %1023 = vmatpush.msra.mxu3 %v2519_v1 }
 0x25a   :  { %1343 = vmatpush.msrb.mxu1 %v2456_v9  ;;  %1187 = vmatpush.msra.mxu2 %v2519_v1 }
 0x25c   :  { %1344 = vmatpush.msrb.mxu1 %v2464_v15 }
 0x25e   :  { %1345 = vmatpush.msrb.mxu1 %v2474_v20 }
 0x260   :  { %1346 = vmatpush.msrb.mxu1 %v2482_v28 }
 0x262   :  { %1347 = vmatpush.msrb.mxu1 %v2490_v40 }
 0x264   :  { %1348 = vmatpush.msrb.mxu1 %v2498_v45 }
 0x266   :  { %1349 = vmatpush.msrb.mxu1 %v2502_v49 }
 0x268   :  { %1350 = vmatpush.msrb.mxu1 %v2511_v58 }
 0x26a   :  { %1351 = vmatpush.msrb.mxu1 %v2519_v1 }
 0x2cf   :  { %v865_v23 = vpop.f32.mrf.mxu0 }
 0x2d0   :  { %v908_v26 = vadd.f32 %v865_v23, %v202_v0  ;;  %v2521_v0 = vld [vmem:[#allocation10 + $0x70] sm:$0xff]  ;;  %v885_v24 = vpop.f32.mrf.mxu1 }
 0x2d1   :  { %v2527_v23 = vld [vmem:[#allocation10 + $0x50] sm:$0xff]  ;;  %1043 = vmatpush.msra.mxu0 %v2521_v0 }
 0x2d2   :  { %v1647_v19 = vmul.f32 -1.442695, %v908_v26  ;;  %v2529_v26 = vld [vmem:[#allocation10 + $0x58] sm:$0xff]  ;;  %1024 = vmatpush.msra.mxu3 %v2527_v23  ;;  %1188 = vmatpush.msra.mxu2 %v2527_v23 }
 0x2d3   :  { %1044 = vmatpush.msra.mxu0 %v2529_v26  ;;  %1352 = vmatpush.msrb.mxu1 %v2527_v23 }
 0x2d4   :  { %1701 = vpow2.f32 %v1647_v19 }
 0x2d5   :  { %v845_v14 = vpop.f32.mrf.mxu3 }
 0x2d6   :  { %v888_v56 = vadd.f32 %v845_v14, %v2264_v12  ;;  %v2537_v14 = vld [vmem:[#allocation10 + $0x38] sm:$0xff] }
 0x2d7   :  { %1025 = vmatpush.msra.mxu3 %v2537_v14  ;;  %1189 = vmatpush.msra.mxu2 %v2537_v14 }
 0x2d8   :  { %v1646_v62 = vmul.f32 -1.442695, %v888_v56  ;;  %v2539_v56 = vld [vmem:[#allocation10 + $0x40] sm:$0xff]  ;;  %1353 = vmatpush.msrb.mxu1 %v2537_v14 }
 0x2d9   :  { %1045 = vmatpush.msra.mxu0 %v2539_v56 }
 0x2da   :  { %v1702_v12 = vpop.eup %1701  ;;  %1703 = vpow2.f32 %v1646_v62  ;;  %v2546_v62 = vld [vmem:[#allocation10 + $0x20] sm:$0xff] }
 0x2db   :  { %v2533_v19 = vadd.f32 1.0, %v1702_v12  ;;  %v2548_v12 = vld [vmem:[#allocation10 + $0x28] sm:$0xff]  ;;  %1026 = vmatpush.msra.mxu3 %v2546_v62  ;;  %1190 = vmatpush.msra.mxu2 %v2546_v62 }
 0x2dc   :  { %1046 = vmatpush.msra.mxu0 %v2548_v12  ;;  %1354 = vmatpush.msrb.mxu1 %v2546_v62 }
 0x2dd   :  { %1705 = vrcp.f32 %v2533_v19  ;;  %1027 = vmatpush.msra.mxu3 %v2554_v6  ;;  %1191 = vmatpush.msra.mxu2 %v2554_v6  ;;  %vm918_vm14 = vweird.f32 %v2533_v19 }
 0x2de   :  { %1047 = vmatpush.msra.mxu0 %v2556_v48  ;;  %1355 = vmatpush.msrb.mxu1 %v2554_v6 }
 0x2df   :  { %1196 = vmatpush.msrb.mxu3 %v2436_v61 }
 0x2e0   :  { %v1704_v38 = vpop.eup %1703  ;;  %1320 = vmatpush.msrb.mxu0 %v2341_v10 }
 0x2e1   :  { %v892_v32 = vadd.f32 1.0, %v1704_v38  ;;  %1197 = vmatpush.msrb.mxu3 %v2442_v8 }
 0x2e2   :  { %1321 = vmatpush.msrb.mxu0 %v2345_v41 }
 0x2e3   :  { %1707 = vrcp.f32 %v892_v32  ;;  %v1706_v31 = vpop.eup %1705  ;;  %1198 = vmatpush.msrb.mxu3 %v2450_v5  ;;  %v904_v25 = vand.u32 2147483648, %v892_v32  ;;  %v902_v41 = vand.u32 2147483647, %v892_v32  ;;  %vm898_vm10 = vweird.f32 %v892_v32 }
 0x2e4   :  { %v914_v38 = vmul.f32 %v1706_v31, %v2533_v19  ;;  %1322 = vmatpush.msrb.mxu0 %v2350_v33  ;;  %vm919_vm13 = vweird.f32 %v1706_v31 }
 0x2e5   :  { %1199 = vmatpush.msrb.mxu3 %v2458_v13  ;;  %vm903_vm12 = vcmp.eq.f32.partialorder %v902_v41, 8.507059e+37  ;;  %vm920_vm15 = vmor %vm918_vm14, %vm919_vm13 }
 0x2e6   :  { %v915_v30 = vsub.f32 1.0, %v914_v38  ;;  %1323 = vmatpush.msrb.mxu0 %v2355_v44  ;;  %v928_v44 = vadd.f32 %v2280_v51, %v885_v24 }
 0x2e7   :  { %1200 = vmatpush.msrb.mxu3 %v2466_v17 }
 0x2e8   :  { %1324 = vmatpush.msrb.mxu0 %v2360_v47  ;;  %v916_v18 = vmul.f32 %v1706_v31, %v915_v30 }
 0x2e9   :  { %v1708_v35 = vpop.eup %1707  ;;  %1201 = vmatpush.msrb.mxu3 %v2476_v22 }
 0x2ea   :  { %v894_v27 = vmul.f32 %v1708_v35, %v892_v32  ;;  %vm899_vm9 = vweird.f32 %v1708_v35  ;;  %1325 = vmatpush.msrb.mxu0 %v2365_v36  ;;  %v917_v38 = vadd.f32 %v1706_v31, %v916_v18  ;;  %v924_v32 = vand.u32 2147483648, %v2533_v19 }
 0x2eb   :  { %1202 = vmatpush.msrb.mxu3 %v2484_v29  ;;  %vm900_vm11 = vmor %vm898_vm10, %vm899_vm9 }
 0x2ec   :  { %v895_v10 = vsub.f32 1.0, %v894_v27  ;;  %v905_v27 = vor.u32 1.1754944e-38, %v904_v25  ;;  %1326 = vmatpush.msrb.mxu0 %v2370_v37  ;;  %v922_v25 = vand.u32 2147483647, %v2533_v19  ;;  %v921_v24 = vsel %vm920_vm15, %v1706_v31, %v917_v38  ;;  %v2732_v38 = vld [vmem:[#allocation22_spill] sm:$0xff] }
 0x2ed   :  { %1203 = vmatpush.msrb.mxu3 %v2492_v43 }
 0x2ee   :  { %v896_v21 = vmul.f32 %v1708_v35, %v895_v10  ;;  %1327 = vmatpush.msrb.mxu0 %v2375_v39  ;;  %vm923_vm0 = vcmp.eq.f32.partialorder %v922_v25, 8.507059e+37 }
 0x2ef   :  { %1204 = vmatpush.msrb.mxu3 %v2500_v46 }
 0x2f0   :  { %v897_v33 = vadd.f32 %v1708_v35, %v896_v21  ;;  %v243_v21 = vadd.f32 %v2312_v16, %v2283_v59  ;;  %1328 = vmatpush.msrb.mxu0 %v2382_v42 }
 0x2f1   :  { %1205 = vmatpush.msrb.mxu3 %v2508_v52 }
 0x2f2   :  { %v901_v47 = vsel %vm900_vm11, %v1708_v35, %v897_v33  ;;  %1329 = vmatpush.msrb.mxu0 %v2388_v50  ;;  %v925_v35 = vor.u32 1.1754944e-38, %v924_v32 }
 0x2f3   :  { %v906_v30 = vsel %vm903_vm12, %v905_v27, %v901_v47  ;;  %1206 = vmatpush.msrb.mxu3 %v2513_v60 }
 0x2f4   :  { %v929_v36 = vmul.f32 %v928_v44, %v906_v30  ;;  %1330 = vmatpush.msrb.mxu0 %v2393_v53  ;;  %v926_v16 = vsel %vm923_vm0, %v925_v35, %v921_v24  ;;  %v2730_v53 = vld [vmem:[#allocation23_spill] sm:$0xff]  ;;  %v246_v30 = vadd.f32 %v2732_v38, %v2283_v59  ;;  %v1472_v38 = vld [vmem:[#allocation10 + $0x120] sm:$0xff] }
 0x2f5   :  { %1207 = vmatpush.msrb.mxu3 %v2521_v0  ;;  %v932_v37 = vsub.f32 1.0, %v926_v16  ;;  %v934_v42 = vmul.f32 %v926_v16, %v2428_v2 }
 0x2f6   :  { %v930_v18 = vadd.f32 %v929_v36, %v243_v21  ;;  %1331 = vmatpush.msrb.mxu0 %v2398_v7  ;;  %v205_v7 = vadd.f32 %v2730_v53, %v2272_v34 }
 0x2f7   :  { %1208 = vmatpush.msrb.mxu3 %v2529_v26 }
 0x2f8   :  { %1709 = vtanh.f32 %v930_v18  ;;  %1332 = vmatpush.msrb.mxu0 %v2403_v54 }
 0x2f9   :  { %1209 = vmatpush.msrb.mxu3 %v2539_v56 }
 0x2fa   :  { %1333 = vmatpush.msrb.mxu0 %v2408_v3 }
 0x2fb   :  { %1210 = vmatpush.msrb.mxu3 %v2548_v12 }
 0x2fc   :  { %1334 = vmatpush.msrb.mxu0 %v2412_v55  ;;  %v2731_v55 = vld [vmem:[#allocation18_spill] sm:$0xff] }
 0x2fd   :  { %1211 = vmatpush.msrb.mxu3 %v2556_v48 }
 0x2fe   :  { %v1710_v31 = vpop.eup %1709  ;;  %1335 = vmatpush.msrb.mxu0 %v2415_v57 }
 0x2ff   :  { %v933_v39 = vmul.f32 %v1710_v31, %v932_v37 }
 0x301   :  { %v2605_v50 = vadd.f32 %v934_v42, %v933_v39 }
 0x303   :  { %938 = vst [vmem:[#allocation12 + $0x18] sm:$0xff] %v2605_v50  ;;  %1008 = vmatmul.f32.vlgmr.msrb.gmra.mxu2 %v2605_v50  ;;  %1028 = vmatmul.f32.vlgmr.msra.gmra.mxu3 %v2605_v50 }
 0x304   :  { %1048 = vmatmul.f32.vlgmr.msra.gmra.mxu0 %v2605_v50  ;;  %1360 = vmatpush.msrb.mxu2 %v2436_v61 }
 0x305   :  { %1504 = vmatpush.msra.mxu0 %v2434_v11 }
 0x306   :  { %1361 = vmatpush.msrb.mxu2 %v2442_v8 }
 0x307   :  { %1505 = vmatpush.msra.mxu0 %v2440_v63 }
 0x308   :  { %1362 = vmatpush.msrb.mxu2 %v2450_v5 }
 0x309   :  { %1506 = vmatpush.msra.mxu0 %v2448_v4 }
 0x30a   :  { %1363 = vmatpush.msrb.mxu2 %v2458_v13 }
 0x30b   :  { %1507 = vmatpush.msra.mxu0 %v2456_v9 }
 0x30c   :  { %1364 = vmatpush.msrb.mxu2 %v2466_v17 }
 0x30d   :  { %1508 = vmatpush.msra.mxu0 %v2464_v15 }
 0x30e   :  { %1365 = vmatpush.msrb.mxu2 %v2476_v22 }
 0x30f   :  { %1509 = vmatpush.msra.mxu0 %v2474_v20 }
 0x310   :  { %1366 = vmatpush.msrb.mxu2 %v2484_v29 }
 0x311   :  { %1510 = vmatpush.msra.mxu0 %v2482_v28 }
 0x312   :  { %1367 = vmatpush.msrb.mxu2 %v2492_v43 }
 0x313   :  { %1511 = vmatpush.msra.mxu0 %v2490_v40 }
 0x314   :  { %1368 = vmatpush.msrb.mxu2 %v2500_v46 }
 0x315   :  { %1512 = vmatpush.msra.mxu0 %v2498_v45 }
 0x316   :  { %1369 = vmatpush.msrb.mxu2 %v2508_v52 }
 0x317   :  { %1513 = vmatpush.msra.mxu0 %v2502_v49 }
 0x318   :  { %1370 = vmatpush.msrb.mxu2 %v2513_v60 }
 0x319   :  { %1514 = vmatpush.msra.mxu0 %v2511_v58 }
 0x31a   :  { %1371 = vmatpush.msrb.mxu2 %v2521_v0 }
 0x31b   :  { %1515 = vmatpush.msra.mxu0 %v2519_v1 }
 0x31c   :  { %1372 = vmatpush.msrb.mxu2 %v2529_v26 }
 0x31d   :  { %1516 = vmatpush.msra.mxu0 %v2527_v23 }
 0x31e   :  { %1373 = vmatpush.msrb.mxu2 %v2539_v56 }
 0x31f   :  { %1517 = vmatpush.msra.mxu0 %v2537_v14 }
 0x320   :  { %1374 = vmatpush.msrb.mxu2 %v2548_v12 }
 0x321   :  { %1518 = vmatpush.msra.mxu0 %v2546_v62 }
 0x322   :  { %1375 = vmatpush.msrb.mxu2 %v2556_v48 }
 0x323   :  { %1519 = vmatpush.msra.mxu0 %v2554_v6 }
 0x381   :  { %v1049_v14 = vpop.f32.mrf.mxu0 }
 0x382   :  { %v1092_v33 = vadd.f32 %v2280_v51, %v1049_v14 }
 0x386   :  { %v1009_v54 = vpop.f32.mrf.mxu2  ;;  %v1029_v3 = vpop.f32.mrf.mxu3 }
 0x387   :  { %v1052_v57 = vadd.f32 %v1009_v54, %v2731_v55  ;;  %v1072_v2 = vadd.f32 %v1029_v3, %v205_v7 }
 0x389   :  { %v1648_v11 = vmul.f32 -1.442695, %v1052_v57  ;;  %v1649_v63 = vmul.f32 -1.442695, %v1072_v2 }
 0x38b   :  { %1711 = vpow2.f32 %v1648_v11 }
 0x38c   :  { %1713 = vpow2.f32 %v1649_v63  ;;  %v2681_v63 = vld [vmem:[%s2716_s4] ss:$0 sm:$0xff]  ;;  %s1889_s4 = smov [#allocation12]  }
 0x38d   :  { %s1599_s17 = sshll.u32 %s1889_s4, 4  ;;  %s1600_s17 = int_to_ptr.vmem [resolvable:$true] %s1599_s17 }
 0x391   :  { %v1712_v4 = vpop.eup %1711 }
 0x392   :  { %v1714_v9 = vpop.eup %1713  ;;  %v1056_v15 = vadd.f32 1.0, %v1712_v4 }
 0x393   :  { %v1076_v20 = vadd.f32 1.0, %v1714_v9  ;;  %v2735_v9 = vld [vmem:[#allocation24_spill] sm:$0xff] }
 0x394   :  { %1715 = vrcp.f32 %v1056_v15  ;;  %v1068_v58 = vand.u32 2147483648, %v1056_v15  ;;  %v1066_v19 = vand.u32 2147483647, %v1056_v15  ;;  %vm1062_vm2 = vweird.f32 %v1056_v15 }
 0x395   :  { %1717 = vrcp.f32 %v1076_v20  ;;  %v1088_v32 = vand.u32 2147483648, %v1076_v20  ;;  %vm1082_vm6 = vweird.f32 %v1076_v20  ;;  %v1086_v36 = vand.u32 2147483647, %v1076_v20 }
 0x396   :  { %v1069_v41 = vor.u32 1.1754944e-38, %v1068_v58  ;;  %vm1067_vm4 = vcmp.eq.f32.partialorder %v1066_v19, 8.507059e+37 }
 0x397   :  { %v1089_v24 = vor.u32 1.1754944e-38, %v1088_v32  ;;  %vm1087_vm8 = vcmp.eq.f32.partialorder %v1086_v36, 8.507059e+37  ;;  %v1463_v32 = vld [vmem:[#allocation10 + $0xd8] sm:$0xff]  ;;  %v1460_v36 = vld [vmem:[#allocation10 + $0xc0] sm:$0xff] }
 0x39a   :  { %v1716_v28 = vpop.eup %1715 }
 0x39b   :  { %v1718_v6 = vpop.eup %1717  ;;  %v1058_v40 = vmul.f32 %v1716_v28, %v1056_v15  ;;  %vm1063_vm1 = vweird.f32 %v1716_v28  ;;  %v249_v15 = vadd.f32 %v2735_v9, %v2283_v59 }
 0x39c   :  { %v1078_v45 = vmul.f32 %v1718_v6, %v1076_v20  ;;  %vm1064_vm3 = vmor %vm1062_vm2, %vm1063_vm1  ;;  %vm1083_vm5 = vweird.f32 %v1718_v6 }
 0x39d   :  { %v1059_v49 = vsub.f32 1.0, %v1058_v40  ;;  %vm1084_vm7 = vmor %vm1082_vm6, %vm1083_vm5 }
 0x39e   :  { %v1079_v1 = vsub.f32 1.0, %v1078_v45 }
 0x39f   :  { %v1060_v23 = vmul.f32 %v1716_v28, %v1059_v49 }
 0x3a0   :  { %v1080_v62 = vmul.f32 %v1718_v6, %v1079_v1 }
 0x3a1   :  { %v1061_v10 = vadd.f32 %v1716_v28, %v1060_v23 }
 0x3a2   :  { %v1081_v47 = vadd.f32 %v1718_v6, %v1080_v62 }
 0x3a3   :  { %v1065_v27 = vsel %vm1064_vm3, %v1716_v28, %v1061_v10 }
 0x3a4   :  { %v1070_v44 = vsel %vm1067_vm4, %v1069_v41, %v1065_v27  ;;  %v1085_v18 = vsel %vm1084_vm7, %v1718_v6, %v1081_v47  ;;  %v1481_v27 = vld [vmem:[#allocation10 + $0x168] sm:$0xff]  ;;  %v1475_v47 = vld [vmem:[#allocation10 + $0x138] sm:$0xff] }
 0x3a5   :  { %v1093_v21 = vmul.f32 %v1092_v33, %v1070_v44  ;;  %v1090_v35 = vsel %vm1087_vm8, %v1089_v24, %v1085_v18  ;;  %1484 = vmatpush.msra.mxu3 %v1481_v27  ;;  %v1478_v44 = vld [vmem:[#allocation10 + $0x150] sm:$0xff]  ;;  %v1457_v24 = vld [vmem:[#allocation10 + $0xa8] sm:$0xff]  ;;  %v2739_v27 = vld [vmem:[#allocation21_spill] sm:$0xff] }
 0x3a6   :  { %v1096_v51 = vsub.f32 1.0, %v1090_v35  ;;  %v1098_v31 = vmul.f32 %v1090_v35, %v2605_v50 }
 0x3a7   :  { %v1094_v25 = vadd.f32 %v1093_v21, %v246_v30  ;;  %1485 = vmatpush.msra.mxu3 %v1478_v44  ;;  %v1469_v30 = vld [vmem:[#allocation10 + $0x108] sm:$0xff]  ;;  %v1466_v21 = vld [vmem:[#allocation10 + $0xf0] sm:$0xff]  ;;  %v214_v44 = vadd.f32 %v2739_v27, %v2272_v34 }
 0x3a9   :  { %1719 = vtanh.f32 %v1094_v25  ;;  %1486 = vmatpush.msra.mxu3 %v1475_v47  ;;  %v2736_v25 = vld [vmem:[#allocation27_spill] sm:$0xff] }
 0x3aa   :  { %v211_v18 = vadd.f32 %v2736_v25, %v2272_v34 }
 0x3ab   :  { %1487 = vmatpush.msra.mxu3 %v1472_v38 }
 0x3ad   :  { %1488 = vmatpush.msra.mxu3 %v1469_v30 }
 0x3af   :  { %v1720_v16 = vpop.eup %1719  ;;  %1489 = vmatpush.msra.mxu3 %v1466_v21 }
 0x3b0   :  { %v1097_v37 = vmul.f32 %v1720_v16, %v1096_v51  ;;  %v2737_v16 = vld [vmem:[#allocation20_spill] sm:$0xff] }
 0x3b1   :  { %1490 = vmatpush.msra.mxu3 %v1463_v32  ;;  %v2740_v32 = vld [vmem:[#allocation17_spill] sm:$0xff] }
 0x3b2   :  { %v2653_v39 = vadd.f32 %v1098_v31, %v1097_v37 }
 0x3b3   :  { %1491 = vmatpush.msra.mxu3 %v1460_v36 }
 0x3b4   :  { %1102 = vst [vmem:[#allocation12 + $0x20] sm:$0xff] %v2653_v39  ;;  %1172 = vmatmul.f32.vlgmr.msra.gmra.mxu1 %v2653_v39  ;;  %1192 = vmatmul.f32.vlgmr.msra.gmra.mxu2 %v2653_v39 }
 0x3b5   :  { %1212 = vmatmul.f32.vlgmr.msrb.gmra.mxu3 %v2653_v39  ;;  %1524 = vmatpush.msra.mxu1 %v2436_v61 }
 0x3b6   :  { %1492 = vmatpush.msra.mxu3 %v1457_v24 }
 0x3b7   :  { %1525 = vmatpush.msra.mxu1 %v2442_v8  ;;  %v2733_v8 = vld [vmem:[#allocation19_spill] sm:$0xff] }
 0x3b9   :  { %1526 = vmatpush.msra.mxu1 %v2450_v5 }
 0x3bb   :  { %1527 = vmatpush.msra.mxu1 %v2458_v13 }
 0x3bd   :  { %1528 = vmatpush.msra.mxu1 %v2466_v17  ;;  %v2734_v17 = vld [vmem:[#allocation25_spill] sm:$0xff] }
 0x3bf   :  { %1529 = vmatpush.msra.mxu1 %v2476_v22  ;;  %v208_v22 = vadd.f32 %v2734_v17, %v2272_v34  ;;  %v1445_v17 = vld [vmem:[#allocation10 + $0x48] sm:$0xff] }
 0x3c1   :  { %1530 = vmatpush.msra.mxu1 %v2484_v29 }
 0x3c3   :  { %1531 = vmatpush.msra.mxu1 %v2492_v43 }
 0x3c5   :  { %1532 = vmatpush.msra.mxu1 %v2500_v46 }
 0x3c7   :  { %1533 = vmatpush.msra.mxu1 %v2508_v52 }
 0x3c9   :  { %1534 = vmatpush.msra.mxu1 %v2513_v60 }
 0x3cb   :  { %1535 = vmatpush.msra.mxu1 %v2521_v0 }
 0x3cd   :  { %1536 = vmatpush.msra.mxu1 %v2529_v26 }
 0x3cf   :  { %1537 = vmatpush.msra.mxu1 %v2539_v56 }
 0x3d1   :  { %1538 = vmatpush.msra.mxu1 %v2548_v12 }
 0x3d3   :  { %1539 = vmatpush.msra.mxu1 %v2556_v48 }
 0x431   :  { %v1173_v61 = vpop.f32.mrf.mxu1 }
 0x432   :  { %v1216_v5 = vadd.f32 %v1173_v61, %v2733_v8 }
 0x434   :  { %v1650_v13 = vmul.f32 -1.442695, %v1216_v5  ;;  %v1451_v5 = vld [vmem:[#allocation10 + $0x78] sm:$0xff] }
 0x436   :  { %1721 = vpow2.f32 %v1650_v13  ;;  %v1448_v13 = vld [vmem:[#allocation10 + $0x60] sm:$0xff] }
 0x437   :  { %v1193_v29 = vpop.f32.mrf.mxu2 }
 0x438   :  { %v1236_v43 = vadd.f32 %v1193_v29, %v208_v22  ;;  %v1213_v54 = vpop.f32.mrf.mxu3  ;;  %v1442_v22 = vld [vmem:[#allocation10 + $0x30] sm:$0xff]  ;;  %v1439_v29 = vld [vmem:[#allocation10 + $0x18] sm:$0xff] }
 0x439   :  { %v1256_v4 = vadd.f32 %v2681_v63, %v1213_v54 }
 0x43a   :  { %v1651_v46 = vmul.f32 -1.442695, %v1236_v43 }
 0x43c   :  { %v1722_v52 = vpop.eup %1721  ;;  %1723 = vpow2.f32 %v1651_v46  ;;  %v1436_v46 = vld [vmem:[#allocation10] sm:$0xff] }
 0x43d   :  { %v1220_v60 = vadd.f32 1.0, %v1722_v52 }
 0x43f   :  { %1725 = vrcp.f32 %v1220_v60  ;;  %v1232_v42 = vand.u32 2147483648, %v1220_v60  ;;  %v1230_v53 = vand.u32 2147483647, %v1220_v60  ;;  %vm1226_vm10 = vweird.f32 %v1220_v60 }
 0x441   :  { %v1233_v57 = vor.u32 1.1754944e-38, %v1232_v42  ;;  %vm1231_vm12 = vcmp.eq.f32.partialorder %v1230_v53, 8.507059e+37 }
 0x442   :  { %v1724_v0 = vpop.eup %1723 }
 0x443   :  { %v1240_v26 = vadd.f32 1.0, %v1724_v0 }
 0x445   :  { %v1726_v56 = vpop.eup %1725  ;;  %1727 = vrcp.f32 %v1240_v26  ;;  %v1252_v6 = vand.u32 2147483648, %v1240_v26  ;;  %v1250_v45 = vand.u32 2147483647, %v1240_v26  ;;  %vm1246_vm14 = vweird.f32 %v1240_v26 }
 0x446   :  { %v1222_v48 = vmul.f32 %v1726_v56, %v1220_v60  ;;  %vm1227_vm9 = vweird.f32 %v1726_v56 }
 0x447   :  { %vm1228_vm11 = vmor %vm1226_vm10, %vm1227_vm9  ;;  %v1253_v1 = vor.u32 1.1754944e-38, %v1252_v6  ;;  %vm1251_vm0 = vcmp.eq.f32.partialorder %v1250_v45, 8.507059e+37 }
 0x448   :  { %v1223_v12 = vsub.f32 1.0, %v1222_v48 }
 0x44a   :  { %v1224_v50 = vmul.f32 %v1726_v56, %v1223_v12 }
 0x44b   :  { %v1728_v7 = vpop.eup %1727 }
 0x44c   :  { %v1242_v3 = vmul.f32 %v1728_v7, %v1240_v26  ;;  %v1225_v55 = vadd.f32 %v1726_v56, %v1224_v50  ;;  %vm1247_vm13 = vweird.f32 %v1728_v7 }
 0x44d   :  { %vm1248_vm15 = vmor %vm1246_vm14, %vm1247_vm13 }
 0x44e   :  { %v1243_v2 = vsub.f32 1.0, %v1242_v3  ;;  %v1229_v11 = vsel %vm1228_vm11, %v1726_v56, %v1225_v55 }
 0x44f   :  { %v1234_v20 = vsel %vm1231_vm12, %v1233_v57, %v1229_v11 }
 0x450   :  { %v1244_v28 = vmul.f32 %v1728_v7, %v1243_v2  ;;  %v1257_v40 = vmul.f32 %v1256_v4, %v1234_v20  ;;  %v2738_v20 = vld [vmem:[#allocation26_spill] sm:$0xff] }
 0x452   :  { %v1245_v49 = vadd.f32 %v1728_v7, %v1244_v28  ;;  %v1258_v58 = vadd.f32 %v1257_v40, %v249_v15  ;;  %v252_v28 = vadd.f32 %v2738_v20, %v2283_v59 }
 0x454   :  { %v1249_v23 = vsel %vm1248_vm15, %v1728_v7, %v1245_v49  ;;  %1729 = vtanh.f32 %v1258_v58 }
 0x455   :  { %v1254_v19 = vsel %vm1251_vm0, %v1253_v1, %v1249_v23 }
 0x456   :  { %v1260_v14 = vsub.f32 1.0, %v1254_v19  ;;  %v1262_v41 = vmul.f32 %v1254_v19, %v2653_v39  ;;  %v1454_v39 = vld [vmem:[#allocation10 + $0x90] sm:$0xff] }
 0x457   :  { %1493 = vmatpush.msra.mxu3 %v1454_v39 }
 0x459   :  { %1494 = vmatpush.msra.mxu3 %v1451_v5 }
 0x45a   :  { %v1730_v62 = vpop.eup %1729 }
 0x45b   :  { %v1261_v10 = vmul.f32 %v1730_v62, %v1260_v14  ;;  %1495 = vmatpush.msra.mxu3 %v1448_v13 }
 0x45d   :  { %v2687_v33 = vadd.f32 %v1262_v41, %v1261_v10  ;;  %1496 = vmatpush.msra.mxu3 %v1445_v17 }
 0x45f   :  { %1266 = vst [vmem:[#allocation12 + $0x28] sm:$0xff] %v2687_v33  ;;  %1336 = vmatmul.f32.vlgmr.msrb.gmra.mxu0 %v2687_v33  ;;  %1356 = vmatmul.f32.vlgmr.msrb.gmra.mxu1 %v2687_v33 }
 0x460   :  { %1376 = vmatmul.f32.vlgmr.msrb.gmra.mxu2 %v2687_v33  ;;  %1497 = vmatpush.msra.mxu3 %v1442_v22 }
 0x462   :  { %1498 = vmatpush.msra.mxu3 %v1439_v29 }
 0x464   :  { %1499 = vmatpush.msra.mxu3 %v1436_v46 }
 0x4dc   :  { %v1337_v35 = vpop.f32.mrf.mxu0  ;;  %v1357_v51 = vpop.f32.mrf.mxu1 }
 0x4dd   :  { %v1380_v37 = vadd.f32 %v1337_v35, %v2737_v16  ;;  %v1400_v31 = vadd.f32 %v1357_v51, %v211_v18 }
 0x4df   :  { %v1652_v61 = vmul.f32 -1.442695, %v1380_v37  ;;  %v1653_v8 = vmul.f32 -1.442695, %v1400_v31 }
 0x4e1   :  { %1731 = vpow2.f32 %v1652_v61 }
 0x4e2   :  { %1733 = vpow2.f32 %v1653_v8 }
 0x4e3   :  { %v1377_v55 = vpop.f32.mrf.mxu2 }
 0x4e4   :  { %v1420_v4 = vadd.f32 %v2681_v63, %v1377_v55 }
 0x4e7   :  { %v1732_v43 = vpop.eup %1731 }
 0x4e8   :  { %v1734_v52 = vpop.eup %1733  ;;  %v1384_v60 = vadd.f32 1.0, %v1732_v43 }
 0x4e9   :  { %v1404_v0 = vadd.f32 1.0, %v1734_v52 }
 0x4ea   :  { %1735 = vrcp.f32 %v1384_v60  ;;  %v1396_v53 = vand.u32 2147483648, %v1384_v60  ;;  %v1394_v54 = vand.u32 2147483647, %v1384_v60  ;;  %vm1390_vm2 = vweird.f32 %v1384_v60 }
 0x4eb   :  { %1737 = vrcp.f32 %v1404_v0  ;;  %v1416_v6 = vand.u32 2147483648, %v1404_v0  ;;  %vm1410_vm6 = vweird.f32 %v1404_v0  ;;  %v1414_v45 = vand.u32 2147483647, %v1404_v0 }
 0x4ec   :  { %v1397_v2 = vor.u32 1.1754944e-38, %v1396_v53  ;;  %vm1395_vm4 = vcmp.eq.f32.partialorder %v1394_v54, 8.507059e+37 }
 0x4ed   :  { %v1417_v1 = vor.u32 1.1754944e-38, %v1416_v6  ;;  %vm1415_vm8 = vcmp.eq.f32.partialorder %v1414_v45, 8.507059e+37 }
 0x4f0   :  { %v1736_v26 = vpop.eup %1735 }
 0x4f1   :  { %v1738_v56 = vpop.eup %1737  ;;  %v1386_v48 = vmul.f32 %v1736_v26, %v1384_v60  ;;  %vm1391_vm1 = vweird.f32 %v1736_v26 }
 0x4f2   :  { %v1406_v12 = vmul.f32 %v1738_v56, %v1404_v0  ;;  %vm1392_vm3 = vmor %vm1390_vm2, %vm1391_vm1  ;;  %vm1411_vm5 = vweird.f32 %v1738_v56  ;;  %v2741_v0 = vld [vmem:[#allocation28_spill] sm:$0xff] }
 0x4f3   :  { %v1387_v42 = vsub.f32 1.0, %v1386_v48  ;;  %vm1412_vm7 = vmor %vm1410_vm6, %vm1411_vm5 }
 0x4f4   :  { %v1407_v50 = vsub.f32 1.0, %v1406_v12 }
 0x4f5   :  { %v1388_v7 = vmul.f32 %v1736_v26, %v1387_v42 }
 0x4f6   :  { %v1408_v3 = vmul.f32 %v1738_v56, %v1407_v50 }
 0x4f7   :  { %v1389_v57 = vadd.f32 %v1736_v26, %v1388_v7 }
 0x4f8   :  { %v1409_v9 = vadd.f32 %v1738_v56, %v1408_v3 }
 0x4f9   :  { %v1393_v11 = vsel %vm1392_vm3, %v1736_v26, %v1389_v57  ;;  %v255_v26 = vadd.f32 %v2741_v0, %v2283_v59 }
 0x4fa   :  { %v1398_v15 = vsel %vm1395_vm4, %v1397_v2, %v1393_v11  ;;  %v1413_v58 = vsel %vm1412_vm7, %v1738_v56, %v1409_v9 }
 0x4fb   :  { %v1421_v40 = vmul.f32 %v1420_v4, %v1398_v15  ;;  %v1418_v23 = vsel %vm1415_vm8, %v1417_v1, %v1413_v58 }
 0x4fc   :  { %v1424_v19 = vsub.f32 1.0, %v1418_v23  ;;  %v1426_v10 = vmul.f32 %v1418_v23, %v2687_v33 }
 0x4fd   :  { %v1422_v49 = vadd.f32 %v1421_v40, %v252_v28 }
 0x4ff   :  { %1739 = vtanh.f32 %v1422_v49 }
 0x505   :  { %v1740_v14 = vpop.eup %1739 }
 0x506   :  { %v1425_v62 = vmul.f32 %v1740_v14, %v1424_v19 }
 0x508   :  { %v1427_v41 = vadd.f32 %v1426_v10, %v1425_v62 }
 0x50a   :  { %1430 = vst [vmem:[#allocation12 + $0x30] sm:$0xff] %v1427_v41  ;;  %1500 = vmatmul.f32.vlgmr.msra.gmra.mxu3 %v1427_v41  ;;  %1520 = vmatmul.f32.vlgmr.msra.gmra.mxu0 %v1427_v41 }
 0x50b   :  { %1540 = vmatmul.f32.vlgmr.msra.gmra.mxu1 %v1427_v41 }
 0x587   :  { %v1521_v47 = vpop.f32.mrf.mxu0 }
 0x588   :  { %v1564_v38 = vadd.f32 %v1521_v47, %v214_v44  ;;  %v1541_v17 = vpop.f32.mrf.mxu1 }
 0x589   :  { %v1584_v43 = vadd.f32 %v2681_v63, %v1541_v17 }
 0x58a   :  { %v1655_v30 = vmul.f32 -1.442695, %v1564_v38 }
 0x58c   :  { %1741 = vpow2.f32 %v1655_v30 }
 0x58d   :  { %v1501_v21 = vpop.f32.mrf.mxu3 }
 0x58e   :  { %v1544_v36 = vadd.f32 %v1501_v21, %v2740_v32 }
 0x590   :  { %v1654_v25 = vmul.f32 -1.442695, %v1544_v36 }
 0x592   :  { %v1742_v18 = vpop.eup %1741  ;;  %1743 = vpow2.f32 %v1654_v25 }
 0x593   :  { %v1568_v24 = vadd.f32 1.0, %v1742_v18 }
 0x595   :  { %1745 = vrcp.f32 %v1568_v24  ;;  %v1580_v56 = vand.u32 2147483648, %v1568_v24  ;;  %vm1574_vm14 = vweird.f32 %v1568_v24  ;;  %v1578_v12 = vand.u32 2147483647, %v1568_v24 }
 0x597   :  { %v1581_v53 = vor.u32 1.1754944e-38, %v1580_v56  ;;  %vm1579_vm0 = vcmp.eq.f32.partialorder %v1578_v12, 8.507059e+37 }
 0x598   :  { %v1744_v33 = vpop.eup %1743 }
 0x599   :  { %v1548_v35 = vadd.f32 1.0, %v1744_v33 }
 0x59b   :  { %1747 = vrcp.f32 %v1548_v35  ;;  %v1746_v51 = vpop.eup %1745  ;;  %v1560_v61 = vand.u32 2147483648, %v1548_v35  ;;  %v1558_v5 = vand.u32 2147483647, %v1548_v35  ;;  %vm1554_vm10 = vweird.f32 %v1548_v35 }
 0x59c   :  { %v1570_v16 = vmul.f32 %v1746_v51, %v1568_v24  ;;  %vm1575_vm13 = vweird.f32 %v1746_v51 }
 0x59d   :  { %v1561_v29 = vor.u32 1.1754944e-38, %v1560_v61  ;;  %vm1559_vm12 = vcmp.eq.f32.partialorder %v1558_v5, 8.507059e+37  ;;  %vm1576_vm15 = vmor %vm1574_vm14, %vm1575_vm13 }
 0x59e   :  { %v1571_v34 = vsub.f32 1.0, %v1570_v16 }
 0x5a0   :  { %v1572_v13 = vmul.f32 %v1746_v51, %v1571_v34 }
 0x5a1   :  { %v1748_v37 = vpop.eup %1747 }
 0x5a2   :  { %v1550_v31 = vmul.f32 %v1748_v37, %v1548_v35  ;;  %vm1555_vm9 = vweird.f32 %v1748_v37  ;;  %v1573_v52 = vadd.f32 %v1746_v51, %v1572_v13 }
 0x5a3   :  { %vm1556_vm11 = vmor %vm1554_vm10, %vm1555_vm9 }
 0x5a4   :  { %v1551_v39 = vsub.f32 1.0, %v1550_v31  ;;  %v1577_v50 = vsel %vm1576_vm15, %v1746_v51, %v1573_v52 }
 0x5a5   :  { %v1582_v7 = vsel %vm1579_vm0, %v1581_v53, %v1577_v50 }
 0x5a6   :  { %v1552_v8 = vmul.f32 %v1748_v37, %v1551_v39  ;;  %v1588_v63 = vsub.f32 1.0, %v1582_v7  ;;  %v1590_v59 = vmul.f32 %v1582_v7, %v1427_v41 }
 0x5a8   :  { %v1553_v22 = vadd.f32 %v1748_v37, %v1552_v8 }
 0x5aa   :  { %v1557_v46 = vsel %vm1556_vm11, %v1748_v37, %v1553_v22 }
 0x5ab   :  { %v1562_v60 = vsel %vm1559_vm12, %v1561_v29, %v1557_v46 }
 0x5ac   :  { %v1585_v48 = vmul.f32 %v1584_v43, %v1562_v60 }
 0x5ae   :  { %v1586_v42 = vadd.f32 %v1585_v48, %v255_v26 }
 0x5b0   :  { %1749 = vtanh.f32 %v1586_v42 }
 0x5b6   :  { %v1750_v54 = vpop.eup %1749 }
 0x5b7   :  { %v1589_v3 = vmul.f32 %v1750_v54, %v1588_v63 }
 0x5b9   :  { %v1591_v55 = vadd.f32 %v1590_v59, %v1589_v3 }
 0x5bb   :  { %1594 = vst [vmem:[#allocation12 + $0x38] sm:$0xff] %v1591_v55 }
 0x5bc   :  { %1607 = dma.vmem_to_hbm [thread:$0]  %s1600_s17, 1024, %s1602_s20, [#allocation6], %s1884_s30, %s1884_s30, %s1885_s6  }
 0x5bd   :  { %1878 = dma.done.wait [#allocation6], 1024  }
 0x5be   :  { %1879 = vsyncadd [#allocation6], 4294966272 }
 0x5bf   :  { %1612 = vsyncpa [#allocation5], 1 }
 0x5c0   :  { %1613 = vsyncpa [#allocation8], 1 }
 0x5c1   :  { %1614 = vsyncpa [#allocation11], 1 }
 0x5c2   :  { %1615 = vsyncpa [#allocation6], 1 }

</bundles_post_ra>
